<compile_context>
chip_gen: v7x
topology: tpu7x:2x2x1
jax: 0.10.0
libtpu: 0.0.40
codegen_flags: <defaults>
</compile_context>

<pallas_src>
import functools

import jax
import jax.numpy as jnp
from jax import lax
from jax.experimental import pallas as pl
from jax.experimental.pallas import tpu as pltpu

_EPS = 1e-5
_NEG_SLOPE = 0.01
_LANES = 128
_HALO_L = 8          # left halo width of the stage-2 scratch: interior starts sublane-aligned
_HALO_W = 16         # total extra columns (8 left + 8 right) so all big stores stay aligned


def _round_up(x, m):
    return ((x + m - 1) // m) * m


def _leaky_relu(x):
    return jnp.where(x > 0, x, _NEG_SLOPE * x)


def _pick_row_chunk(h, w):
    """Output-row chunk: divides H exactly, flattened pixel count ~64-512 rows
    (MXU-friendly M), multiple of 8 rows when possible (aligned sublane stores)."""
    best = 1
    for rc in range(1, h + 1):
        if h % rc == 0 and rc * w <= 512:
            best = rc
            if rc % 8 == 0 and rc * w >= 64:
                return rc
    return best


def _default_work_dtype():
    """bf16 activation storage + bf16 MXU operands on v6e/v7x (native); f32 on v5e and
    older (v5e VPU has no bf16 — converts would land on the binding VALU slot)."""
    try:
        kind = jax.devices()[0].device_kind.lower()
    except Exception:
        return jnp.float32
    if "v6" in kind or "v7" in kind:
        return jnp.bfloat16
    return jnp.float32


# --------------------------------------------------------------------------
# shared in-kernel helper: chunked depthwise 3x3 -> pointwise 1x1 + BN partials
# --------------------------------------------------------------------------
def _dwsep_from_halo(src_ref, col0, wdw_ref, wpw_ref, z_ref, st_ref, row_chunk):
    """src_ref: (H+2, >=col0+W+2, Cin) zero-halo input in VMEM; tap kw reads columns
    [col0+kw, col0+kw+W). wdw_ref: (3,3,Cin) f32. wpw_ref: (Cin,Cout) in the MXU operand
    dtype. z_ref: (H,W,Cout) storage dtype. st_ref: (2,Cout) f32 BN partials [sum, sum_sq].

    Work is chunked over `row_chunk` output rows via lax.fori_loop: bounds vreg live
    ranges (no H-unrolled monolith), keeps the loop visible to the scheduler, and
    interleaves VPU depthwise work with per-chunk MXU matmuls instead of two serial
    whole-block phases. Each chunk's kw-shifted view is hoisted once and reused for the
    three kh taps (kh slices are outer-dim only, i.e. free)."""
    H, W, Cout = z_ref.shape
    Cin = src_ref.shape[-1]
    mxu_dtype = wpw_ref.dtype
    wdw = wdw_ref[...]
    wpw = wpw_ref[...]
    n_chunks = H // row_chunk

    def chunk_body(c, carry):
        s_acc, ss_acc = carry
        r0 = pl.multiple_of(c * row_chunk, row_chunk)
        acc = None
        for kw in range(3):
            # one sublane-shifted load per kw (3 per chunk instead of 9)
            xk = src_ref[pl.ds(r0, row_chunk + 2),
                         col0 + kw:col0 + kw + W, :].astype(jnp.float32)
            for kh in range(3):
                t = xk[kh:kh + row_chunk] * wdw[kh, kw:kw + 1, :]
                acc = t if acc is None else acc + t      # first tap initializes (no zeros+add)
        # Pointwise 1x1 for this chunk: one lane-dense MXU matmul, f32 accumulation.
        lhs = acc.reshape(row_chunk * W, Cin).astype(mxu_dtype)
        z = jnp.dot(lhs, wpw, preferred_element_type=jnp.float32)
        z_ref[pl.ds(r0, row_chunk), :, :] = (
            z.reshape(row_chunk, W, Cout).astype(z_ref.dtype))
        # BN partial stats stay in f32 regardless of the storage dtype.
        return (s_acc + jnp.sum(z, axis=0, keepdims=True),
                ss_acc + jnp.sum(z * z, axis=0, keepdims=True))

    init = (jnp.zeros((1, Cout), jnp.float32), jnp.zeros((1, Cout), jnp.float32))
    s_tot, ss_tot = lax.fori_loop(0, n_chunks, chunk_body, init)
    st_ref[0:1, :] = s_tot
    st_ref[1:2, :] = ss_tot


# ------------------------------- kernels ----------------------------------
def _stage1_kernel(xpad_ref, wdw_ref, wpw_ref, z_ref, st_ref, *, row_chunk):
    _dwsep_from_halo(xpad_ref, 0, wdw_ref, wpw_ref, z_ref, st_ref, row_chunk)


def _stage2_kernel(z1_ref, scale_ref, shift_ref, wdw_ref, wpw_ref,
                   z2_ref, st_ref, hpad_ref, *, row_chunk):
    H, W, _ = z1_ref.shape
    C = hpad_ref.shape[-1]
    # Zero only the halo border, every grid step: far cheaper than zeroing the whole
    # scratch, and (unlike a program_id==0 guard) correct even if the 'parallel' grid
    # axis is sharded across TensorCores, each with its own scratch instance.
    zcol = jnp.zeros((H + 2, _HALO_L, C), hpad_ref.dtype)
    hpad_ref[:, 0:_HALO_L, :] = zcol
    hpad_ref[:, _HALO_L + W:, :] = zcol
    zrow = jnp.zeros((1, W, C), hpad_ref.dtype)
    hpad_ref[0:1, _HALO_L:_HALO_L + W, :] = zrow
    hpad_ref[H + 1:H + 2, _HALO_L:_HALO_L + W, :] = zrow
    # Fused BN1 (precomputed per-channel scale/shift) + LeakyReLU, written into the
    # sublane-aligned interior (column offset 8) of the zero-halo scratch: one unmasked
    # aligned store, no HBM-level jnp.pad round trip before the second depthwise conv.
    h1 = _leaky_relu(z1_ref[...].astype(jnp.float32) * scale_ref[...] + shift_ref[...])
    hpad_ref[1:H + 1, _HALO_L:_HALO_L + W, :] = h1.astype(hpad_ref.dtype)
    _dwsep_from_halo(hpad_ref, _HALO_L - 1, wdw_ref, wpw_ref, z2_ref, st_ref, row_chunk)


# ---------------------------- pallas_call wrappers -------------------------
def _stage1_call(x_pad, wdw, wpw, H, W):
    N, _, _, cin_p = x_pad.shape
    cout_p = wpw.shape[-1]
    act_dtype = x_pad.dtype
    rc = _pick_row_chunk(H, W)
    isz = x_pad.dtype.itemsize
    cost = pl.CostEstimate(
        flops=N * H * W * (18 * cin_p + 2 * cin_p * cout_p + 4 * cout_p),
        transcendentals=0,
        bytes_accessed=(isz * (x_pad.size + N * H * W * cout_p)
                        + 4 * (N * 2 * cout_p + wdw.size)
                        + wpw.dtype.itemsize * wpw.size))
    return pl.pallas_call(
        functools.partial(_stage1_kernel, row_chunk=rc),
        out_shape=(jax.ShapeDtypeStruct((N, H, W, cout_p), act_dtype),
                   jax.ShapeDtypeStruct((N, 2, cout_p), jnp.float32)),
        grid=(N,),
        in_specs=[
            pl.BlockSpec((None, H + 2, W + 2, cin_p), lambda n: (n, 0, 0, 0)),
            pl.BlockSpec((3, 3, cin_p), lambda n: (0, 0, 0)),
            pl.BlockSpec((cin_p, cout_p), lambda n: (0, 0)),
        ],
        out_specs=(
            pl.BlockSpec((None, H, W, cout_p), lambda n: (n, 0, 0, 0)),
            pl.BlockSpec((None, 2, cout_p), lambda n: (n, 0, 0)),
        ),
        compiler_params=pltpu.CompilerParams(
            dimension_semantics=("parallel",),
            # Demo blocks are tiny; for scaled H-tiled versions raise toward ~96 MB on
            # v5e/v6e (128 MiB VMEM) and keep <= ~48-56 MB on v7x (64 MiB VMEM).
            vmem_limit_bytes=32 * 1024 * 1024),
        cost_estimate=cost,
    )(x_pad, wdw, wpw)


def _stage2_call(z1, scale1, shift1, wdw, wpw):
    N, H, W, cin_p = z1.shape
    cout_p = wpw.shape[-1]
    act_dtype = z1.dtype
    rc = _pick_row_chunk(H, W)
    isz = z1.dtype.itemsize
    cost = pl.CostEstimate(
        flops=N * H * W * (4 * cin_p + 18 * cin_p + 2 * cin_p * cout_p + 4 * cout_p),
        transcendentals=0,
        bytes_accessed=(isz * (z1.size + N * H * W * cout_p)
                        + 4 * (N * 2 * cout_p + wdw.size + scale1.size + shift1.size)
                        + wpw.dtype.itemsize * wpw.size))
    return pl.pallas_call(
        functools.partial(_stage2_kernel, row_chunk=rc),
        out_shape=(jax.ShapeDtypeStruct((N, H, W, cout_p), act_dtype),
                   jax.ShapeDtypeStruct((N, 2, cout_p), jnp.float32)),
        grid=(N,),
        in_specs=[
            pl.BlockSpec((None, H, W, cin_p), lambda n: (n, 0, 0, 0)),
            pl.BlockSpec((1, cin_p), lambda n: (0, 0)),
            pl.BlockSpec((1, cin_p), lambda n: (0, 0)),
            pl.BlockSpec((3, 3, cin_p), lambda n: (0, 0, 0)),
            pl.BlockSpec((cin_p, cout_p), lambda n: (0, 0)),
        ],
        out_specs=(
            pl.BlockSpec((None, H, W, cout_p), lambda n: (n, 0, 0, 0)),
            pl.BlockSpec((None, 2, cout_p), lambda n: (n, 0, 0)),
        ),
        scratch_shapes=[pltpu.VMEM((H + 2, W + _HALO_W, cin_p), act_dtype)],
        input_output_aliases={0: 0},     # reuse z1's HBM buffer for z2 (identical block maps)
        compiler_params=pltpu.CompilerParams(
            dimension_semantics=("parallel",),
            vmem_limit_bytes=32 * 1024 * 1024),
        cost_estimate=cost,
    )(z1, scale1, shift1, wdw, wpw)


# --------------------------- BN finalize (tiny, XLA) ------------------------
def _bn_scale_shift(stats, gamma_p, beta_p, count):
    """stats: (N, 2, Cp) per-block [sum, sum_sq] -> per-channel BN scale/shift (f32)."""
    total = jnp.sum(stats, axis=0)                                   # (2, Cp)
    mean = total[0] / count
    var = jnp.maximum(total[1] / count - mean * mean, 0.0)           # biased (training) var
    inv = lax.rsqrt(var + _EPS)
    scale = gamma_p * inv
    shift = beta_p - mean * scale
    return scale.reshape(1, -1), shift.reshape(1, -1)


# ------------------------------ full module --------------------------------
def depth_double_conv(x, params, *, work_dtype=None):
    """Forward of DepthDoubleConv: [DWSepConv -> BN(batch stats) -> LeakyReLU] x 2.

    x: (N, Cin, H, W) float32 NCHW (PyTorch convention). Returns (N, Cout, H, W) f32.
    work_dtype: storage dtype of intermediate activations + MXU operand dtype.
      None -> bf16 on v6e/v7x, f32 on v5e/older. BN statistics, scale/shift math,
      depthwise accumulation and matmul accumulation always stay in f32.
    """
    if work_dtype is None:
        work_dtype = _default_work_dtype()
    work_dtype = jnp.dtype(work_dtype)
    N, cin, H, W = x.shape
    cout = params["pw1_w"].shape[0]
    cin_p = _round_up(cin, _LANES)
    cout_p = _round_up(cout, _LANES)
    M = N * H * W
    f32 = jnp.float32

    # Entry layout glue, done exactly once: NCHW -> NHWC, channel pad to a lane multiple
    # and a 1-pixel spatial halo for the first depthwise conv (one fused XLA op).
    # TODO(synk): at real UNet sizes add an H-tile grid axis with halo-overlapping input
    # blocks instead of this HBM-materialized pad, and keep tiny Cin unpadded in HBM
    # (pad lanes inside the kernel) to avoid the Cp/Cin input-traffic inflation.
    x_pad = jnp.pad(jnp.transpose(x, (0, 2, 3, 1)),
                    ((0, 0), (1, 1), (1, 1), (0, cin_p - cin))).astype(work_dtype)

    # Parameter re-layout (tiny): channels-last, zero-padded to the lane width.
    # Depthwise taps stay f32 (VPU f32 accumulation); pointwise weights are cast to the
    # MXU operand dtype (bf16 on v6e/v7x, f32 on v5e).
    wdw1 = jnp.pad(jnp.transpose(params["dw1_w"], (1, 2, 0)),
                   ((0, 0), (0, 0), (0, cin_p - cin))).astype(f32)       # (3,3,Cin_p)
    wpw1 = jnp.pad(jnp.transpose(params["pw1_w"], (1, 0)),
                   ((0, cin_p - cin), (0, cout_p - cout))).astype(work_dtype)
    wdw2 = jnp.pad(jnp.transpose(params["dw2_w"], (1, 2, 0)),
                   ((0, 0), (0, 0), (0, cout_p - cout))).astype(f32)     # (3,3,Cout_p)
    wpw2 = jnp.pad(jnp.transpose(params["pw2_w"], (1, 0)),
                   ((0, cout_p - cout), (0, cout_p - cout))).astype(work_dtype)
    g1 = jnp.pad(params["bn1_g"], (0, cout_p - cout))
    b1 = jnp.pad(params["bn1_b"], (0, cout_p - cout))
    g2 = jnp.pad(params["bn2_g"], (0, cout_p - cout))
    b2 = jnp.pad(params["bn2_b"], (0, cout_p - cout))
    # Conv biases (dw*_b, pw*_b) are exactly cancelled by the training-mode BN mean
    # subtraction, so they are intentionally not fed to the kernels.

    # Fused pipeline: 2 pallas_calls.
    z1, st1 = _stage1_call(x_pad, wdw1, wpw1, H, W)
    scale1, shift1 = _bn_scale_shift(st1, g1, b1, M)
    z2, st2 = _stage2_call(z1, scale1, shift1, wdw2, wpw2)
    scale2, shift2 = _bn_scale_shift(st2, g2, b2, M)

    # Exit glue, done exactly once: BN2 + LeakyReLU + drop channel padding + NHWC->NCHW,
    # fused by XLA into the transpose pass it already pays for (no third pallas_call).
    y = _leaky_relu(z2.astype(f32) * scale2.reshape(1, 1, 1, -1)
                    + shift2.reshape(1, 1, 1, -1))
    return jnp.transpose(y[..., :cout], (0, 3, 1, 2))


def init_params(key, in_channels, out_channels):
    ks = jax.random.split(key, 8)
    f32 = jnp.float32
    return {
        # DepthwiseSeparableConv2D #1 (biases kept for parameter parity with the
        # PyTorch module; they are mathematically inert under training-mode BN).
        "dw1_w": 0.2 * jax.random.normal(ks[0], (in_channels, 3, 3), f32),
        "dw1_b": 0.1 * jax.random.normal(ks[1], (in_channels,), f32),
        "pw1_w": 0.2 * jax.random.normal(ks[2], (out_channels, in_channels), f32),
        "pw1_b": 0.1 * jax.random.normal(ks[3], (out_channels,), f32),
        # BatchNorm2d #1
        "bn1_g": jnp.ones((out_channels,), f32),
        "bn1_b": jnp.zeros((out_channels,), f32),
        # DepthwiseSeparableConv2D #2
        "dw2_w": 0.2 * jax.random.normal(ks[4], (out_channels, 3, 3), f32),
        "dw2_b": 0.1 * jax.random.normal(ks[5], (out_channels,), f32),
        "pw2_w": 0.2 * jax.random.normal(ks[6], (out_channels, out_channels), f32),
        "pw2_b": 0.1 * jax.random.normal(ks[7], (out_channels,), f32),
        # BatchNorm2d #2
        "bn2_g": jnp.ones((out_channels,), f32),
        "bn2_b": jnp.zeros((out_channels,), f32),
    }


# ----------------------- pure-JAX reference (sanity) ------------------------
def _ref_forward(x, params):
    def dw(x, w, b):                               # depthwise 3x3, padding=1, bias
        return lax.conv_general_dilated(
            x, w[:, None, :, :], window_strides=(1, 1), padding=((1, 1), (1, 1)),
            dimension_numbers=("NCHW", "OIHW", "NCHW"),
            feature_group_count=x.shape[1]) + b[None, :, None, None]

    def pw(x, w, b):                               # pointwise 1x1, bias
        return jnp.einsum("nchw,oc->nohw", x, w) + b[None, :, None, None]

    def bn_lrelu(x, g, bta):                       # training-mode BN + LeakyReLU
        mean = jnp.mean(x, axis=(0, 2, 3), keepdims=True)
        var = jnp.mean(jnp.square(x - mean), axis=(0, 2, 3), keepdims=True)
        y = (x - mean) * lax.rsqrt(var + _EPS)
        y = y * g[None, :, None, None] + bta[None, :, None, None]
        return jnp.where(y > 0, y, _NEG_SLOPE * y)

    h = bn_lrelu(pw(dw(x, params["dw1_w"], params["dw1_b"]),
                    params["pw1_w"], params["pw1_b"]),
                 params["bn1_g"], params["bn1_b"])
    h = bn_lrelu(pw(dw(h, params["dw2_w"], params["dw2_b"]),
                    params["pw2_w"], params["pw2_b"]),
                 params["bn2_g"], params["bn2_b"])
    return h


if __name__ == "__main__":
    key = jax.random.PRNGKey(0)
    k_x, k_p = jax.random.split(key)

    N, Cin, Cout, H, W = 2, 4, 8, 16, 16
    x = jax.random.normal(k_x, (N, Cin, H, W), jnp.float32)   # NCHW
    params = init_params(k_p, Cin, Cout)

    ref = _ref_forward(x, params)

    # Exact-semantics path (f32 storage + f32 MXU operands): tight check.
    out = jax.jit(functools.partial(depth_double_conv, work_dtype=jnp.float32))(x, params)
    out = jax.block_until_ready(out)
    assert out.shape == (N, Cout, H, W), out.shape
    assert bool(jnp.all(jnp.isfinite(out)))
    max_err = float(jnp.max(jnp.abs(out - ref)))
    assert max_err < 2e-3, f"f32 path mismatch vs reference: max abs err {max_err}"

    # Device-default path (bf16 storage + bf16 MXU operands on v6e/v7x, f32 elsewhere):
    # loose check — bf16 intermediates feeding training-mode BN shift values by O(1e-2).
    out_auto = jax.block_until_ready(jax.jit(depth_double_conv)(x, params))
    assert out_auto.shape == (N, Cout, H, W)
    assert bool(jnp.all(jnp.isfinite(out_auto)))
    tol = 2e-3 if jnp.dtype(_default_work_dtype()) == jnp.dtype(jnp.float32) else 2.5e-1
    err_auto = float(jnp.max(jnp.abs(out_auto - ref)))
    assert err_auto < tol, f"auto-dtype path mismatch vs reference: max abs err {err_auto}"

    print("KERNEL_OK")
</pallas_src>

<mosaic_0001>
module attributes {stable_mosaic.version = 11 : i64} {
  func.func @_stage1_kernel(%arg0: i32, %arg1: memref<1x18x18x128xf32, #tpu.memory_space<vmem>>, %arg2: memref<3x3x128xf32, #tpu.memory_space<vmem>>, %arg3: memref<128x128xf32, #tpu.memory_space<vmem>>, %arg4: memref<1x16x16x128xf32, #tpu.memory_space<vmem>>, %arg5: memref<1x2x128xf32, #tpu.memory_space<vmem>>) attributes {dimension_semantics = [#tpu.dimension_semantics<parallel>], iteration_bounds = array<i64: 2>, scalar_prefetch = 0 : i64, scratch_operands = 0 : i64, tpu.core_type = #tpu.core_type<tc>, window_params = [{transform_indices = @transform_0, window_bounds = array<i64: 1, 18, 18, 128>}, {pipeline_mode = #tpu.pipeline_mode<synchronous>, transform_indices = @transform_1, window_bounds = array<i64: 3, 3, 128>}, {pipeline_mode = #tpu.pipeline_mode<synchronous>, transform_indices = @transform_2, window_bounds = array<i64: 128, 128>}, {transform_indices = @transform_3, window_bounds = array<i64: 1, 16, 16, 128>}, {transform_indices = @transform_4, window_bounds = array<i64: 1, 2, 128>}]} {
    %c0 = arith.constant 0 : index
    %c0_0 = arith.constant 0 : index
    %c0_1 = arith.constant 0 : index
    %0 = vector.load %arg2[%c0, %c0_0, %c0_1] : memref<3x3x128xf32, #tpu.memory_space<vmem>>, vector<3x3x128xf32>
    %c0_2 = arith.constant 0 : index
    %c0_3 = arith.constant 0 : index
    %1 = vector.load %arg3[%c0_2, %c0_3] : memref<128x128xf32, #tpu.memory_space<vmem>>, vector<128x128xf32>
    %cst = arith.constant 0.000000e+00 : f32
    %2 = vector.broadcast %cst : f32 to vector<1x128xf32>
    %cst_4 = arith.constant 0.000000e+00 : f32
    %3 = vector.broadcast %cst_4 : f32 to vector<1x128xf32>
    %c0_i32 = arith.constant 0 : i32
    %c2_i32 = arith.constant 2 : i32
    %4 = arith.addi %c0_i32, %c2_i32 : i32
    %c1_i32 = arith.constant 1 : i32
    %5:2 = scf.for %arg6 = %c0_i32 to %4 step %c1_i32 iter_args(%arg7 = %2, %arg8 = %3) -> (vector<1x128xf32>, vector<1x128xf32>)  : i32 {
      %c8_i32 = arith.constant 8 : i32
      %12 = arith.muli %arg6, %c8_i32 : i32
      %13 = tpu.assume_multiple %12, 8 : i32
      %c0_11 = arith.constant 0 : index
      %14 = arith.index_cast %13 : i32 to index
      %c0_12 = arith.constant 0 : index
      %c0_13 = arith.constant 0 : index
      %15 = vector.load %arg1[%c0_11, %14, %c0_12, %c0_13] : memref<1x18x18x128xf32, #tpu.memory_space<vmem>>, vector<1x10x16x128xf32>
      %16 = vector.shape_cast %15 : vector<1x10x16x128xf32> to vector<10x16x128xf32>
      %17 = vector.extract_strided_slice %16 {offsets = [0, 0, 0], sizes = [8, 16, 128], strides = [1, 1, 1]} : vector<10x16x128xf32> to vector<8x16x128xf32>
      %18 = vector.extract_strided_slice %0 {offsets = [0, 0, 0], sizes = [1, 1, 128], strides = [1, 1, 1]} : vector<3x3x128xf32> to vector<1x1x128xf32>
      %19 = vector.shape_cast %18 : vector<1x1x128xf32> to vector<1x128xf32>
      %20 = vector.shape_cast %19 : vector<1x128xf32> to vector<1x1x128xf32>
      %21 = vector.broadcast %20 : vector<1x1x128xf32> to vector<8x16x128xf32>
      %22 = arith.mulf %17, %21 : vector<8x16x128xf32>
      %23 = vector.extract_strided_slice %16 {offsets = [1, 0, 0], sizes = [8, 16, 128], strides = [1, 1, 1]} : vector<10x16x128xf32> to vector<8x16x128xf32>
      %24 = vector.extract_strided_slice %0 {offsets = [1, 0, 0], sizes = [1, 1, 128], strides = [1, 1, 1]} : vector<3x3x128xf32> to vector<1x1x128xf32>
      %25 = vector.shape_cast %24 : vector<1x1x128xf32> to vector<1x128xf32>
      %26 = vector.shape_cast %25 : vector<1x128xf32> to vector<1x1x128xf32>
      %27 = vector.broadcast %26 : vector<1x1x128xf32> to vector<8x16x128xf32>
      %28 = arith.mulf %23, %27 : vector<8x16x128xf32>
      %29 = arith.addf %22, %28 : vector<8x16x128xf32>
      %30 = vector.extract_strided_slice %16 {offsets = [2, 0, 0], sizes = [8, 16, 128], strides = [1, 1, 1]} : vector<10x16x128xf32> to vector<8x16x128xf32>
      %31 = vector.extract_strided_slice %0 {offsets = [2, 0, 0], sizes = [1, 1, 128], strides = [1, 1, 1]} : vector<3x3x128xf32> to vector<1x1x128xf32>
      %32 = vector.shape_cast %31 : vector<1x1x128xf32> to vector<1x128xf32>
      %33 = vector.shape_cast %32 : vector<1x128xf32> to vector<1x1x128xf32>
      %34 = vector.broadcast %33 : vector<1x1x128xf32> to vector<8x16x128xf32>
      %35 = arith.mulf %30, %34 : vector<8x16x128xf32>
      %36 = arith.addf %29, %35 : vector<8x16x128xf32>
      %c0_14 = arith.constant 0 : index
      %37 = arith.index_cast %13 : i32 to index
      %c1_15 = arith.constant 1 : index
      %c0_16 = arith.constant 0 : index
      %38 = vector.load %arg1[%c0_14, %37, %c1_15, %c0_16] : memref<1x18x18x128xf32, #tpu.memory_space<vmem>>, vector<1x10x16x128xf32>
      %39 = vector.shape_cast %38 : vector<1x10x16x128xf32> to vector<10x16x128xf32>
      %40 = vector.extract_strided_slice %39 {offsets = [0, 0, 0], sizes = [8, 16, 128], strides = [1, 1, 1]} : vector<10x16x128xf32> to vector<8x16x128xf32>
      %41 = vector.extract_strided_slice %0 {offsets = [0, 1, 0], sizes = [1, 1, 128], strides = [1, 1, 1]} : vector<3x3x128xf32> to vector<1x1x128xf32>
      %42 = vector.shape_cast %41 : vector<1x1x128xf32> to vector<1x128xf32>
      %43 = vector.shape_cast %42 : vector<1x128xf32> to vector<1x1x128xf32>
      %44 = vector.broadcast %43 : vector<1x1x128xf32> to vector<8x16x128xf32>
      %45 = arith.mulf %40, %44 : vector<8x16x128xf32>
      %46 = arith.addf %36, %45 : vector<8x16x128xf32>
      %47 = vector.extract_strided_slice %39 {offsets = [1, 0, 0], sizes = [8, 16, 128], strides = [1, 1, 1]} : vector<10x16x128xf32> to vector<8x16x128xf32>
      %48 = vector.extract_strided_slice %0 {offsets = [1, 1, 0], sizes = [1, 1, 128], strides = [1, 1, 1]} : vector<3x3x128xf32> to vector<1x1x128xf32>
      %49 = vector.shape_cast %48 : vector<1x1x128xf32> to vector<1x128xf32>
      %50 = vector.shape_cast %49 : vector<1x128xf32> to vector<1x1x128xf32>
      %51 = vector.broadcast %50 : vector<1x1x128xf32> to vector<8x16x128xf32>
      %52 = arith.mulf %47, %51 : vector<8x16x128xf32>
      %53 = arith.addf %46, %52 : vector<8x16x128xf32>
      %54 = vector.extract_strided_slice %39 {offsets = [2, 0, 0], sizes = [8, 16, 128], strides = [1, 1, 1]} : vector<10x16x128xf32> to vector<8x16x128xf32>
      %55 = vector.extract_strided_slice %0 {offsets = [2, 1, 0], sizes = [1, 1, 128], strides = [1, 1, 1]} : vector<3x3x128xf32> to vector<1x1x128xf32>
      %56 = vector.shape_cast %55 : vector<1x1x128xf32> to vector<1x128xf32>
      %57 = vector.shape_cast %56 : vector<1x128xf32> to vector<1x1x128xf32>
      %58 = vector.broadcast %57 : vector<1x1x128xf32> to vector<8x16x128xf32>
      %59 = arith.mulf %54, %58 : vector<8x16x128xf32>
      %60 = arith.addf %53, %59 : vector<8x16x128xf32>
      %c0_17 = arith.constant 0 : index
      %61 = arith.index_cast %13 : i32 to index
      %c2 = arith.constant 2 : index
      %c0_18 = arith.constant 0 : index
      %62 = vector.load %arg1[%c0_17, %61, %c2, %c0_18] : memref<1x18x18x128xf32, #tpu.memory_space<vmem>>, vector<1x10x16x128xf32>
      %63 = vector.shape_cast %62 : vector<1x10x16x128xf32> to vector<10x16x128xf32>
      %64 = vector.extract_strided_slice %63 {offsets = [0, 0, 0], sizes = [8, 16, 128], strides = [1, 1, 1]} : vector<10x16x128xf32> to vector<8x16x128xf32>
      %65 = vector.extract_strided_slice %0 {offsets = [0, 2, 0], sizes = [1, 1, 128], strides = [1, 1, 1]} : vector<3x3x128xf32> to vector<1x1x128xf32>
      %66 = vector.shape_cast %65 : vector<1x1x128xf32> to vector<1x128xf32>
      %67 = vector.shape_cast %66 : vector<1x128xf32> to vector<1x1x128xf32>
      %68 = vector.broadcast %67 : vector<1x1x128xf32> to vector<8x16x128xf32>
      %69 = arith.mulf %64, %68 : vector<8x16x128xf32>
      %70 = arith.addf %60, %69 : vector<8x16x128xf32>
      %71 = vector.extract_strided_slice %63 {offsets = [1, 0, 0], sizes = [8, 16, 128], strides = [1, 1, 1]} : vector<10x16x128xf32> to vector<8x16x128xf32>
      %72 = vector.extract_strided_slice %0 {offsets = [1, 2, 0], sizes = [1, 1, 128], strides = [1, 1, 1]} : vector<3x3x128xf32> to vector<1x1x128xf32>
      %73 = vector.shape_cast %72 : vector<1x1x128xf32> to vector<1x128xf32>
      %74 = vector.shape_cast %73 : vector<1x128xf32> to vector<1x1x128xf32>
      %75 = vector.broadcast %74 : vector<1x1x128xf32> to vector<8x16x128xf32>
      %76 = arith.mulf %71, %75 : vector<8x16x128xf32>
      %77 = arith.addf %70, %76 : vector<8x16x128xf32>
      %78 = vector.extract_strided_slice %63 {offsets = [2, 0, 0], sizes = [8, 16, 128], strides = [1, 1, 1]} : vector<10x16x128xf32> to vector<8x16x128xf32>
      %79 = vector.extract_strided_slice %0 {offsets = [2, 2, 0], sizes = [1, 1, 128], strides = [1, 1, 1]} : vector<3x3x128xf32> to vector<1x1x128xf32>
      %80 = vector.shape_cast %79 : vector<1x1x128xf32> to vector<1x128xf32>
      %81 = vector.shape_cast %80 : vector<1x128xf32> to vector<1x1x128xf32>
      %82 = vector.broadcast %81 : vector<1x1x128xf32> to vector<8x16x128xf32>
      %83 = arith.mulf %78, %82 : vector<8x16x128xf32>
      %84 = arith.addf %77, %83 : vector<8x16x128xf32>
      %85 = vector.shape_cast %84 : vector<8x16x128xf32> to vector<128x128xf32>
      %cst_19 = arith.constant dense<0.000000e+00> : vector<128x128xf32>
      %86 = tpu.matmul %85, %1, %cst_19 {dimension_numbers = #tpu.dot_dimension_numbers<[1], [0], [0], [1], [0, 0, 1, 1], [], []>} : vector<128x128xf32>, vector<128x128xf32>, vector<128x128xf32> -> vector<128x128xf32>
      %87 = vector.shape_cast %86 : vector<128x128xf32> to vector<8x16x128xf32>
      %c0_20 = arith.constant 0 : index
      %88 = arith.index_cast %13 : i32 to index
      %c0_21 = arith.constant 0 : index
      %c0_22 = arith.constant 0 : index
      %89 = vector.load %arg4[%c0_20, %88, %c0_21, %c0_22] : memref<1x16x16x128xf32, #tpu.memory_space<vmem>>, vector<1x8x16x128xf32>
      %90 = vector.shape_cast %89 : vector<1x8x16x128xf32> to vector<8x16x128xf32>
      %91 = vector.shape_cast %87 : vector<8x16x128xf32> to vector<1x8x16x128xf32>
      tpu.vector_store %arg4[%c0_20, %88, %c0_21, %c0_22], %91 {strides = array<i32>} : memref<1x16x16x128xf32, #tpu.memory_space<vmem>>, vector<1x8x16x128xf32>,
      %cst_23 = arith.constant dense<0.000000e+00> : vector<128xf32>
      %92 = vector.multi_reduction <add>, %86, %cst_23 [0] : vector<128x128xf32> to vector<128xf32>
      %93 = vector.shape_cast %92 : vector<128xf32> to vector<1x128xf32>
      %94 = arith.addf %arg7, %93 : vector<1x128xf32>
      %95 = arith.mulf %86, %86 : vector<128x128xf32>
      %cst_24 = arith.constant dense<0.000000e+00> : vector<128xf32>
      %96 = vector.multi_reduction <add>, %95, %cst_24 [0] : vector<128x128xf32> to vector<128xf32>
      %97 = vector.shape_cast %96 : vector<128xf32> to vector<1x128xf32>
      %98 = arith.addf %arg8, %97 : vector<1x128xf32>
      scf.yield %94, %98 : vector<1x128xf32>, vector<1x128xf32>
    }
    %c2_i32_5 = arith.constant 2 : i32
    %c0_6 = arith.constant 0 : index
    %c0_7 = arith.constant 0 : index
    %c0_8 = arith.constant 0 : index
    %6 = vector.load %arg5[%c0_6, %c0_7, %c0_8] : memref<1x2x128xf32, #tpu.memory_space<vmem>>, vector<1x1x128xf32>
    %7 = vector.shape_cast %6 : vector<1x1x128xf32> to vector<1x128xf32>
    %8 = vector.shape_cast %5#0 : vector<1x128xf32> to vector<1x1x128xf32>
    tpu.vector_store %arg5[%c0_6, %c0_7, %c0_8], %8 {strides = array<i32>} : memref<1x2x128xf32, #tpu.memory_space<vmem>>, vector<1x1x128xf32>,
    %c0_9 = arith.constant 0 : index
    %c1 = arith.constant 1 : index
    %c0_10 = arith.constant 0 : index
    %9 = vector.load %arg5[%c0_9, %c1, %c0_10] : memref<1x2x128xf32, #tpu.memory_space<vmem>>, vector<1x1x128xf32>
    %10 = vector.shape_cast %9 : vector<1x1x128xf32> to vector<1x128xf32>
    %11 = vector.shape_cast %5#1 : vector<1x128xf32> to vector<1x1x128xf32>
    tpu.vector_store %arg5[%c0_9, %c1, %c0_10], %11 {strides = array<i32>} : memref<1x2x128xf32, #tpu.memory_space<vmem>>, vector<1x1x128xf32>,
    return
  }
  func.func @transform_0(%arg0: i32) -> (i32, i32, i32, i32) {
    %c0_i32 = arith.constant 0 : i32
    %c0_i32_0 = arith.constant 0 : i32
    %c0_i32_1 = arith.constant 0 : i32
    %c0_i32_2 = arith.constant 0 : i32
    return %arg0, %c0_i32, %c0_i32_0, %c0_i32_1 : i32, i32, i32, i32
  }
  func.func @transform_1(%arg0: i32) -> (i32, i32, i32) {
    %c0_i32 = arith.constant 0 : i32
    %c0_i32_0 = arith.constant 0 : i32
    %c0_i32_1 = arith.constant 0 : i32
    %c0_i32_2 = arith.constant 0 : i32
    return %c0_i32, %c0_i32_0, %c0_i32_1 : i32, i32, i32
  }
  func.func @transform_2(%arg0: i32) -> (i32, i32) {
    %c0_i32 = arith.constant 0 : i32
    %c0_i32_0 = arith.constant 0 : i32
    %c0_i32_1 = arith.constant 0 : i32
    return %c0_i32, %c0_i32_0 : i32, i32
  }
  func.func @transform_3(%arg0: i32) -> (i32, i32, i32, i32) {
    %c0_i32 = arith.constant 0 : i32
    %c0_i32_0 = arith.constant 0 : i32
    %c0_i32_1 = arith.constant 0 : i32
    %c0_i32_2 = arith.constant 0 : i32
    return %arg0, %c0_i32, %c0_i32_0, %c0_i32_1 : i32, i32, i32, i32
  }
  func.func @transform_4(%arg0: i32) -> (i32, i32, i32) {
    %c0_i32 = arith.constant 0 : i32
    %c0_i32_0 = arith.constant 0 : i32
    %c0_i32_1 = arith.constant 0 : i32
    return %arg0, %c0_i32, %c0_i32_0 : i32, i32, i32
  }
}

module attributes {stable_mosaic.version = 11 : i64} {
  func.func @_stage2_kernel(%arg0: i32, %arg1: memref<1x16x16x128xf32, #tpu.memory_space<vmem>>, %arg2: memref<1x128xf32, #tpu.memory_space<vmem>>, %arg3: memref<1x128xf32, #tpu.memory_space<vmem>>, %arg4: memref<3x3x128xf32, #tpu.memory_space<vmem>>, %arg5: memref<128x128xf32, #tpu.memory_space<vmem>>, %arg6: memref<1x16x16x128xf32, #tpu.memory_space<vmem>>, %arg7: memref<1x2x128xf32, #tpu.memory_space<vmem>>, %arg8: memref<18x32x128xf32, #tpu.memory_space<vmem>>) attributes {dimension_semantics = [#tpu.dimension_semantics<parallel>], iteration_bounds = array<i64: 2>, scalar_prefetch = 0 : i64, scratch_operands = 1 : i64, tpu.core_type = #tpu.core_type<tc>, window_params = [{transform_indices = @transform_0, window_bounds = array<i64: 1, 16, 16, 128>}, {pipeline_mode = #tpu.pipeline_mode<synchronous>, transform_indices = @transform_1, window_bounds = array<i64: 1, 128>}, {pipeline_mode = #tpu.pipeline_mode<synchronous>, transform_indices = @transform_2, window_bounds = array<i64: 1, 128>}, {pipeline_mode = #tpu.pipeline_mode<synchronous>, transform_indices = @transform_3, window_bounds = array<i64: 3, 3, 128>}, {pipeline_mode = #tpu.pipeline_mode<synchronous>, transform_indices = @transform_4, window_bounds = array<i64: 128, 128>}, {transform_indices = @transform_5, window_bounds = array<i64: 1, 16, 16, 128>}, {transform_indices = @transform_6, window_bounds = array<i64: 1, 2, 128>}]} {
    %cst = arith.constant 0.000000e+00 : f32
    %0 = vector.broadcast %cst : f32 to vector<18x8x128xf32>
    %c0 = arith.constant 0 : index
    %c0_0 = arith.constant 0 : index
    %c0_1 = arith.constant 0 : index
    %1 = vector.load %arg8[%c0, %c0_0, %c0_1] : memref<18x32x128xf32, #tpu.memory_space<vmem>>, vector<18x8x128xf32>
    tpu.vector_store %arg8[%c0, %c0_0, %c0_1], %0 {strides = array<i32>} : memref<18x32x128xf32, #tpu.memory_space<vmem>>, vector<18x8x128xf32>,
    %c0_2 = arith.constant 0 : index
    %c24 = arith.constant 24 : index
    %c0_3 = arith.constant 0 : index
    %2 = vector.load %arg8[%c0_2, %c24, %c0_3] : memref<18x32x128xf32, #tpu.memory_space<vmem>>, vector<18x8x128xf32>
    tpu.vector_store %arg8[%c0_2, %c24, %c0_3], %0 {strides = array<i32>} : memref<18x32x128xf32, #tpu.memory_space<vmem>>, vector<18x8x128xf32>,
    %cst_4 = arith.constant 0.000000e+00 : f32
    %3 = vector.broadcast %cst_4 : f32 to vector<1x16x128xf32>
    %c0_5 = arith.constant 0 : index
    %c8 = arith.constant 8 : index
    %c0_6 = arith.constant 0 : index
    %4 = vector.load %arg8[%c0_5, %c8, %c0_6] : memref<18x32x128xf32, #tpu.memory_space<vmem>>, vector<1x16x128xf32>
    tpu.vector_store %arg8[%c0_5, %c8, %c0_6], %3 {strides = array<i32>} : memref<18x32x128xf32, #tpu.memory_space<vmem>>, vector<1x16x128xf32>,
    %c17 = arith.constant 17 : index
    %c8_7 = arith.constant 8 : index
    %c0_8 = arith.constant 0 : index
    %5 = vector.load %arg8[%c17, %c8_7, %c0_8] : memref<18x32x128xf32, #tpu.memory_space<vmem>>, vector<1x16x128xf32>
    tpu.vector_store %arg8[%c17, %c8_7, %c0_8], %3 {strides = array<i32>} : memref<18x32x128xf32, #tpu.memory_space<vmem>>, vector<1x16x128xf32>,
    %c0_9 = arith.constant 0 : index
    %c0_10 = arith.constant 0 : index
    %c0_11 = arith.constant 0 : index
    %c0_12 = arith.constant 0 : index
    %6 = vector.load %arg1[%c0_9, %c0_10, %c0_11, %c0_12] : memref<1x16x16x128xf32, #tpu.memory_space<vmem>>, vector<1x16x16x128xf32>
    %7 = vector.shape_cast %6 : vector<1x16x16x128xf32> to vector<16x16x128xf32>
    %c0_13 = arith.constant 0 : index
    %c0_14 = arith.constant 0 : index
    %8 = vector.load %arg2[%c0_13, %c0_14] : memref<1x128xf32, #tpu.memory_space<vmem>>, vector<1x128xf32>
    %9 = vector.shape_cast %8 : vector<1x128xf32> to vector<1x1x128xf32>
    %10 = vector.broadcast %9 : vector<1x1x128xf32> to vector<16x16x128xf32>
    %11 = arith.mulf %7, %10 : vector<16x16x128xf32>
    %c0_15 = arith.constant 0 : index
    %c0_16 = arith.constant 0 : index
    %12 = vector.load %arg3[%c0_15, %c0_16] : memref<1x128xf32, #tpu.memory_space<vmem>>, vector<1x128xf32>
    %13 = vector.shape_cast %12 : vector<1x128xf32> to vector<1x1x128xf32>
    %14 = vector.broadcast %13 : vector<1x1x128xf32> to vector<16x16x128xf32>
    %15 = arith.addf %11, %14 : vector<16x16x128xf32>
    %cst_17 = arith.constant 0.000000e+00 : f32
    %16 = vector.broadcast %cst_17 : f32 to vector<16x16x128xf32>
    %17 = arith.cmpf ogt, %15, %16 : vector<16x16x128xf32>
    %cst_18 = arith.constant 0.00999999977 : f32
    %18 = vector.broadcast %cst_18 : f32 to vector<16x16x128xf32>
    %19 = arith.mulf %18, %15 : vector<16x16x128xf32>
    %20 = arith.select %17, %15, %19 : vector<16x16x128xi1>, vector<16x16x128xf32>
    %c1 = arith.constant 1 : index
    %c8_19 = arith.constant 8 : index
    %c0_20 = arith.constant 0 : index
    %21 = vector.load %arg8[%c1, %c8_19, %c0_20] : memref<18x32x128xf32, #tpu.memory_space<vmem>>, vector<16x16x128xf32>
    tpu.vector_store %arg8[%c1, %c8_19, %c0_20], %20 {strides = array<i32>} : memref<18x32x128xf32, #tpu.memory_space<vmem>>, vector<16x16x128xf32>,
    %c0_21 = arith.constant 0 : index
    %c0_22 = arith.constant 0 : index
    %c0_23 = arith.constant 0 : index
    %22 = vector.load %arg4[%c0_21, %c0_22, %c0_23] : memref<3x3x128xf32, #tpu.memory_space<vmem>>, vector<3x3x128xf32>
    %c0_24 = arith.constant 0 : index
    %c0_25 = arith.constant 0 : index
    %23 = vector.load %arg5[%c0_24, %c0_25] : memref<128x128xf32, #tpu.memory_space<vmem>>, vector<128x128xf32>
    %cst_26 = arith.constant 0.000000e+00 : f32
    %24 = vector.broadcast %cst_26 : f32 to vector<1x128xf32>
    %cst_27 = arith.constant 0.000000e+00 : f32
    %25 = vector.broadcast %cst_27 : f32 to vector<1x128xf32>
    %c0_i32 = arith.constant 0 : i32
    %c2_i32 = arith.constant 2 : i32
    %26 = arith.addi %c0_i32, %c2_i32 : i32
    %c1_i32 = arith.constant 1 : i32
    %27:2 = scf.for %arg9 = %c0_i32 to %26 step %c1_i32 iter_args(%arg10 = %24, %arg11 = %25) -> (vector<1x128xf32>, vector<1x128xf32>)  : i32 {
      %c8_i32 = arith.constant 8 : i32
      %34 = arith.muli %arg9, %c8_i32 : i32
      %35 = tpu.assume_multiple %34, 8 : i32
      %36 = arith.index_cast %35 : i32 to index
      %c7 = arith.constant 7 : index
      %c0_35 = arith.constant 0 : index
      %37 = vector.load %arg8[%36, %c7, %c0_35] : memref<18x32x128xf32, #tpu.memory_space<vmem>>, vector<10x16x128xf32>
      %38 = vector.extract_strided_slice %37 {offsets = [0, 0, 0], sizes = [8, 16, 128], strides = [1, 1, 1]} : vector<10x16x128xf32> to vector<8x16x128xf32>
      %39 = vector.extract_strided_slice %22 {offsets = [0, 0, 0], sizes = [1, 1, 128], strides = [1, 1, 1]} : vector<3x3x128xf32> to vector<1x1x128xf32>
      %40 = vector.shape_cast %39 : vector<1x1x128xf32> to vector<1x128xf32>
      %41 = vector.shape_cast %40 : vector<1x128xf32> to vector<1x1x128xf32>
      %42 = vector.broadcast %41 : vector<1x1x128xf32> to vector<8x16x128xf32>
      %43 = arith.mulf %38, %42 : vector<8x16x128xf32>
      %44 = vector.extract_strided_slice %37 {offsets = [1, 0, 0], sizes = [8, 16, 128], strides = [1, 1, 1]} : vector<10x16x128xf32> to vector<8x16x128xf32>
      %45 = vector.extract_strided_slice %22 {offsets = [1, 0, 0], sizes = [1, 1, 128], strides = [1, 1, 1]} : vector<3x3x128xf32> to vector<1x1x128xf32>
      %46 = vector.shape_cast %45 : vector<1x1x128xf32> to vector<1x128xf32>
      %47 = vector.shape_cast %46 : vector<1x128xf32> to vector<1x1x128xf32>
      %48 = vector.broadcast %47 : vector<1x1x128xf32> to vector<8x16x128xf32>
      %49 = arith.mulf %44, %48 : vector<8x16x128xf32>
      %50 = arith.addf %43, %49 : vector<8x16x128xf32>
      %51 = vector.extract_strided_slice %37 {offsets = [2, 0, 0], sizes = [8, 16, 128], strides = [1, 1, 1]} : vector<10x16x128xf32> to vector<8x16x128xf32>
      %52 = vector.extract_strided_slice %22 {offsets = [2, 0, 0], sizes = [1, 1, 128], strides = [1, 1, 1]} : vector<3x3x128xf32> to vector<1x1x128xf32>
      %53 = vector.shape_cast %52 : vector<1x1x128xf32> to vector<1x128xf32>
      %54 = vector.shape_cast %53 : vector<1x128xf32> to vector<1x1x128xf32>
      %55 = vector.broadcast %54 : vector<1x1x128xf32> to vector<8x16x128xf32>
      %56 = arith.mulf %51, %55 : vector<8x16x128xf32>
      %57 = arith.addf %50, %56 : vector<8x16x128xf32>
      %58 = arith.index_cast %35 : i32 to index
      %c8_36 = arith.constant 8 : index
      %c0_37 = arith.constant 0 : index
      %59 = vector.load %arg8[%58, %c8_36, %c0_37] : memref<18x32x128xf32, #tpu.memory_space<vmem>>, vector<10x16x128xf32>
      %60 = vector.extract_strided_slice %59 {offsets = [0, 0, 0], sizes = [8, 16, 128], strides = [1, 1, 1]} : vector<10x16x128xf32> to vector<8x16x128xf32>
      %61 = vector.extract_strided_slice %22 {offsets = [0, 1, 0], sizes = [1, 1, 128], strides = [1, 1, 1]} : vector<3x3x128xf32> to vector<1x1x128xf32>
      %62 = vector.shape_cast %61 : vector<1x1x128xf32> to vector<1x128xf32>
      %63 = vector.shape_cast %62 : vector<1x128xf32> to vector<1x1x128xf32>
      %64 = vector.broadcast %63 : vector<1x1x128xf32> to vector<8x16x128xf32>
      %65 = arith.mulf %60, %64 : vector<8x16x128xf32>
      %66 = arith.addf %57, %65 : vector<8x16x128xf32>
      %67 = vector.extract_strided_slice %59 {offsets = [1, 0, 0], sizes = [8, 16, 128], strides = [1, 1, 1]} : vector<10x16x128xf32> to vector<8x16x128xf32>
      %68 = vector.extract_strided_slice %22 {offsets = [1, 1, 0], sizes = [1, 1, 128], strides = [1, 1, 1]} : vector<3x3x128xf32> to vector<1x1x128xf32>
      %69 = vector.shape_cast %68 : vector<1x1x128xf32> to vector<1x128xf32>
      %70 = vector.shape_cast %69 : vector<1x128xf32> to vector<1x1x128xf32>
      %71 = vector.broadcast %70 : vector<1x1x128xf32> to vector<8x16x128xf32>
      %72 = arith.mulf %67, %71 : vector<8x16x128xf32>
      %73 = arith.addf %66, %72 : vector<8x16x128xf32>
      %74 = vector.extract_strided_slice %59 {offsets = [2, 0, 0], sizes = [8, 16, 128], strides = [1, 1, 1]} : vector<10x16x128xf32> to vector<8x16x128xf32>
      %75 = vector.extract_strided_slice %22 {offsets = [2, 1, 0], sizes = [1, 1, 128], strides = [1, 1, 1]} : vector<3x3x128xf32> to vector<1x1x128xf32>
      %76 = vector.shape_cast %75 : vector<1x1x128xf32> to vector<1x128xf32>
      %77 = vector.shape_cast %76 : vector<1x128xf32> to vector<1x1x128xf32>
      %78 = vector.broadcast %77 : vector<1x1x128xf32> to vector<8x16x128xf32>
      %79 = arith.mulf %74, %78 : vector<8x16x128xf32>
      %80 = arith.addf %73, %79 : vector<8x16x128xf32>
      %81 = arith.index_cast %35 : i32 to index
      %c9 = arith.constant 9 : index
      %c0_38 = arith.constant 0 : index
      %82 = vector.load %arg8[%81, %c9, %c0_38] : memref<18x32x128xf32, #tpu.memory_space<vmem>>, vector<10x16x128xf32>
      %83 = vector.extract_strided_slice %82 {offsets = [0, 0, 0], sizes = [8, 16, 128], strides = [1, 1, 1]} : vector<10x16x128xf32> to vector<8x16x128xf32>
      %84 = vector.extract_strided_slice %22 {offsets = [0, 2, 0], sizes = [1, 1, 128], strides = [1, 1, 1]} : vector<3x3x128xf32> to vector<1x1x128xf32>
      %85 = vector.shape_cast %84 : vector<1x1x128xf32> to vector<1x128xf32>
      %86 = vector.shape_cast %85 : vector<1x128xf32> to vector<1x1x128xf32>
      %87 = vector.broadcast %86 : vector<1x1x128xf32> to vector<8x16x128xf32>
      %88 = arith.mulf %83, %87 : vector<8x16x128xf32>
      %89 = arith.addf %80, %88 : vector<8x16x128xf32>
      %90 = vector.extract_strided_slice %82 {offsets = [1, 0, 0], sizes = [8, 16, 128], strides = [1, 1, 1]} : vector<10x16x128xf32> to vector<8x16x128xf32>
      %91 = vector.extract_strided_slice %22 {offsets = [1, 2, 0], sizes = [1, 1, 128], strides = [1, 1, 1]} : vector<3x3x128xf32> to vector<1x1x128xf32>
      %92 = vector.shape_cast %91 : vector<1x1x128xf32> to vector<1x128xf32>
      %93 = vector.shape_cast %92 : vector<1x128xf32> to vector<1x1x128xf32>
      %94 = vector.broadcast %93 : vector<1x1x128xf32> to vector<8x16x128xf32>
      %95 = arith.mulf %90, %94 : vector<8x16x128xf32>
      %96 = arith.addf %89, %95 : vector<8x16x128xf32>
      %97 = vector.extract_strided_slice %82 {offsets = [2, 0, 0], sizes = [8, 16, 128], strides = [1, 1, 1]} : vector<10x16x128xf32> to vector<8x16x128xf32>
      %98 = vector.extract_strided_slice %22 {offsets = [2, 2, 0], sizes = [1, 1, 128], strides = [1, 1, 1]} : vector<3x3x128xf32> to vector<1x1x128xf32>
      %99 = vector.shape_cast %98 : vector<1x1x128xf32> to vector<1x128xf32>
      %100 = vector.shape_cast %99 : vector<1x128xf32> to vector<1x1x128xf32>
      %101 = vector.broadcast %100 : vector<1x1x128xf32> to vector<8x16x128xf32>
      %102 = arith.mulf %97, %101 : vector<8x16x128xf32>
      %103 = arith.addf %96, %102 : vector<8x16x128xf32>
      %104 = vector.shape_cast %103 : vector<8x16x128xf32> to vector<128x128xf32>
      %cst_39 = arith.constant dense<0.000000e+00> : vector<128x128xf32>
      %105 = tpu.matmul %104, %23, %cst_39 {dimension_numbers = #tpu.dot_dimension_numbers<[1], [0], [0], [1], [0, 0, 1, 1], [], []>} : vector<128x128xf32>, vector<128x128xf32>, vector<128x128xf32> -> vector<128x128xf32>
      %106 = vector.shape_cast %105 : vector<128x128xf32> to vector<8x16x128xf32>
      %c0_40 = arith.constant 0 : index
      %107 = arith.index_cast %35 : i32 to index
      %c0_41 = arith.constant 0 : index
      %c0_42 = arith.constant 0 : index
      %108 = vector.load %arg6[%c0_40, %107, %c0_41, %c0_42] : memref<1x16x16x128xf32, #tpu.memory_space<vmem>>, vector<1x8x16x128xf32>
      %109 = vector.shape_cast %108 : vector<1x8x16x128xf32> to vector<8x16x128xf32>
      %110 = vector.shape_cast %106 : vector<8x16x128xf32> to vector<1x8x16x128xf32>
      tpu.vector_store %arg6[%c0_40, %107, %c0_41, %c0_42], %110 {strides = array<i32>} : memref<1x16x16x128xf32, #tpu.memory_space<vmem>>, vector<1x8x16x128xf32>,
      %cst_43 = arith.constant dense<0.000000e+00> : vector<128xf32>
      %111 = vector.multi_reduction <add>, %105, %cst_43 [0] : vector<128x128xf32> to vector<128xf32>
      %112 = vector.shape_cast %111 : vector<128xf32> to vector<1x128xf32>
      %113 = arith.addf %arg10, %112 : vector<1x128xf32>
      %114 = arith.mulf %105, %105 : vector<128x128xf32>
      %cst_44 = arith.constant dense<0.000000e+00> : vector<128xf32>
      %115 = vector.multi_reduction <add>, %114, %cst_44 [0] : vector<128x128xf32> to vector<128xf32>
      %116 = vector.shape_cast %115 : vector<128xf32> to vector<1x128xf32>
      %117 = arith.addf %arg11, %116 : vector<1x128xf32>
      scf.yield %113, %117 : vector<1x128xf32>, vector<1x128xf32>
    }
    %c2_i32_28 = arith.constant 2 : i32
    %c0_29 = arith.constant 0 : index
    %c0_30 = arith.constant 0 : index
    %c0_31 = arith.constant 0 : index
    %28 = vector.load %arg7[%c0_29, %c0_30, %c0_31] : memref<1x2x128xf32, #tpu.memory_space<vmem>>, vector<1x1x128xf32>
    %29 = vector.shape_cast %28 : vector<1x1x128xf32> to vector<1x128xf32>
    %30 = vector.shape_cast %27#0 : vector<1x128xf32> to vector<1x1x128xf32>
    tpu.vector_store %arg7[%c0_29, %c0_30, %c0_31], %30 {strides = array<i32>} : memref<1x2x128xf32, #tpu.memory_space<vmem>>, vector<1x1x128xf32>,
    %c0_32 = arith.constant 0 : index
    %c1_33 = arith.constant 1 : index
    %c0_34 = arith.constant 0 : index
    %31 = vector.load %arg7[%c0_32, %c1_33, %c0_34] : memref<1x2x128xf32, #tpu.memory_space<vmem>>, vector<1x1x128xf32>
    %32 = vector.shape_cast %31 : vector<1x1x128xf32> to vector<1x128xf32>
    %33 = vector.shape_cast %27#1 : vector<1x128xf32> to vector<1x1x128xf32>
    tpu.vector_store %arg7[%c0_32, %c1_33, %c0_34], %33 {strides = array<i32>} : memref<1x2x128xf32, #tpu.memory_space<vmem>>, vector<1x1x128xf32>,
    return
  }
  func.func @transform_0(%arg0: i32) -> (i32, i32, i32, i32) {
    %c0_i32 = arith.constant 0 : i32
    %c0_i32_0 = arith.constant 0 : i32
    %c0_i32_1 = arith.constant 0 : i32
    %c0_i32_2 = arith.constant 0 : i32
    return %arg0, %c0_i32, %c0_i32_0, %c0_i32_1 : i32, i32, i32, i32
  }
  func.func @transform_1(%arg0: i32) -> (i32, i32) {
    %c0_i32 = arith.constant 0 : i32
    %c0_i32_0 = arith.constant 0 : i32
    %c0_i32_1 = arith.constant 0 : i32
    return %c0_i32, %c0_i32_0 : i32, i32
  }
  func.func @transform_2(%arg0: i32) -> (i32, i32) {
    %c0_i32 = arith.constant 0 : i32
    %c0_i32_0 = arith.constant 0 : i32
    %c0_i32_1 = arith.constant 0 : i32
    return %c0_i32, %c0_i32_0 : i32, i32
  }
  func.func @transform_3(%arg0: i32) -> (i32, i32, i32) {
    %c0_i32 = arith.constant 0 : i32
    %c0_i32_0 = arith.constant 0 : i32
    %c0_i32_1 = arith.constant 0 : i32
    %c0_i32_2 = arith.constant 0 : i32
    return %c0_i32, %c0_i32_0, %c0_i32_1 : i32, i32, i32
  }
  func.func @transform_4(%arg0: i32) -> (i32, i32) {
    %c0_i32 = arith.constant 0 : i32
    %c0_i32_0 = arith.constant 0 : i32
    %c0_i32_1 = arith.constant 0 : i32
    return %c0_i32, %c0_i32_0 : i32, i32
  }
  func.func @transform_5(%arg0: i32) -> (i32, i32, i32, i32) {
    %c0_i32 = arith.constant 0 : i32
    %c0_i32_0 = arith.constant 0 : i32
    %c0_i32_1 = arith.constant 0 : i32
    %c0_i32_2 = arith.constant 0 : i32
    return %arg0, %c0_i32, %c0_i32_0, %c0_i32_1 : i32, i32, i32, i32
  }
  func.func @transform_6(%arg0: i32) -> (i32, i32, i32) {
    %c0_i32 = arith.constant 0 : i32
    %c0_i32_0 = arith.constant 0 : i32
    %c0_i32_1 = arith.constant 0 : i32
    return %arg0, %c0_i32, %c0_i32_0 : i32, i32, i32
  }
}

</mosaic_0001>

<bundles_post_ra>
// kernel: depth_double_conv.2
= control target key start
LH: loop header
LB: loop body
LE: loop exit
PB: predicated region body
PF: predicated region fallthrough
CT: control target
= control target key end

     0   :  { %s1175_s15 = smov 0   ;;  %s1794_s0 = inlined_call_operand.vmem [shape: f32[2,18,18,128], index: 0, kind: input, shape index: {}]   ;;  %s1795_s1 = inlined_call_operand.vmem [shape: f32[3,3,128], index: 1, kind: input, shape index: {}]   ;;  %s1796_s2 = inlined_call_operand.vmem [shape: f32[128,128], index: 2, kind: input, shape index: {}]   ;;  %s1797_s3 = inlined_call_operand.vmem [shape: f32[2,16,16,128], index: 3, kind: output, shape index: {0}]   ;;  %s1798_s4 = inlined_call_operand.vmem [shape: f32[2,2,128], index: 4, kind: output, shape index: {1}]  }
   0x1 LB: > { %s933_s16 = sadd.s32 4294967295, %s1136_s15   ;;  %p937_p0 = scmp.ge.s32.totalorder %s1136_s15, 1  ;;  %s1136_s15 = sphi %s1175_s15, %s15_s15  }
   0x2   : > { %p165_p1 = scmp.lt.s32.totalorder %s1136_s15, 3 }
   0x4   : > { %p166_p2 = pnand %p937_p0, %p165_p1 }
   0x6   : > { %169 = sbr.rel (%p166_p2) target bundleno = 345 (0x159), region = 32 }
   0xd   : > { %p195_p3 = scmp.lt.s32.totalorder %s933_s16, 1  ;;  %v1186_v0 = vld [vmem:[%s1795_s1] sm:$0x7]  ;;  %v1191_v1 = vld [vmem:[%s1795_s1 + $0x4] sm:$0x7]  ;;  %v1206_v4 = vld [vmem:[%s1796_s2 + $0x8] sm:$0xff] }
   0xe   : > { %1802 = vst [vmem:[#allocation2_spill] sm:$0xff] %v1186_v0  ;;  %1803 = vst [vmem:[#allocation3_spill] sm:$0xff] %v1191_v1  ;;  %v1196_v2 = vld [vmem:[%s1796_s2] sm:$0xff]  ;;  %v1201_v3 = vld [vmem:[%s1795_s1 + $0x8] sm:$0x7]  ;;  %v1293_v19 = vmov 0.0  }
   0xf   : > { %1804 = vst [vmem:[#allocation4_spill] sm:$0xff] %v1196_v2  ;;  %1805 = vst [vmem:[#allocation5_spill] sm:$0xff] %v1201_v3  ;;  %v1211_v5 = vld [vmem:[%s1796_s2 + $0x10] sm:$0xff]  ;;  %s1821_s16 = smov (!%p195_p3, %s933_s16), 1  ;;  %v1216_v6 = vld [vmem:[%s1796_s2 + $0x18] sm:$0xff]  ;;  %v1295_v20 = vmov 0.0  }
  0x10   : > { %1806 = vst [vmem:[#allocation6_spill] sm:$0xff] %v1206_v4  ;;  %1807 = vst [vmem:[#allocation7_spill] sm:$0xff] %v1211_v5  ;;  %v1221_v7 = vld [vmem:[%s1796_s2 + $0x20] sm:$0xff]  ;;  %v1226_v8 = vld [vmem:[%s1796_s2 + $0x28] sm:$0xff]  ;;  %s1085_s17 = smul.u32 432, %s1821_s16  ;;  %s947_s18 = sshll.u32 %s1821_s16, 8 }
  0x11   : > { %1808 = vst [vmem:[#allocation8_spill] sm:$0xff] %v1216_v6  ;;  %1809 = vst [vmem:[#allocation9_spill] sm:$0xff] %v1221_v7  ;;  %v1231_v9 = vld [vmem:[%s1796_s2 + $0x30] sm:$0xff]  ;;  %v1236_v10 = vld [vmem:[%s1796_s2 + $0x38] sm:$0xff]  ;;  %s1261_s27 = scalar_lea.vmem %s1797_s3, %s947_s18  ;;  %s941_s28 = sshll.u32 %s1821_s16, 1 }
  0x12   : > { %v1241_v11 = vld [vmem:[%s1796_s2 + $0x40] sm:$0xff]  ;;  %v1246_v12 = vld [vmem:[%s1796_s2 + $0x48] sm:$0xff]  ;;  %v1251_v13 = vld [vmem:[%s1796_s2 + $0x50] sm:$0xff]  ;;  %s1281_s11 = scalar_lea.vmem %s1794_s0, %s1085_s17  ;;  %s1286_s13 = scalar_lea.vmem %s1798_s4, %s941_s28 }
  0x13   : > { %v1256_v14 = vld [vmem:[%s1796_s2 + $0x58] sm:$0xff]  ;;  %v1266_v15 = vld [vmem:[%s1796_s2 + $0x60] sm:$0xff]  ;;  %v1271_v16 = vld [vmem:[%s1796_s2 + $0x68] sm:$0xff]  ;;  %s1297_s19 = smov 0  }
  0x14   : > { %v1276_v17 = vld [vmem:[%s1796_s2 + $0x70] sm:$0xff]  ;;  %v1291_v18 = vld [vmem:[%s1796_s2 + $0x78] sm:$0xff] }
  0x15 LB: >> { %v1811_v1 = vld [vmem:[#allocation3_spill] sm:$0xff]  ;;  %v1812_v0 = vld [vmem:[#allocation2_spill] sm:$0xff]  ;;  %s943_s17 = smul.u32 192, %s1148_s19  ;;  %v259_v23 = vlaneseq  ;;  %v1049_v28 = vpack.c.bf16 %v1236_v10, %v1231_v9  ;;  %v1053_v36 = vpack.c.bf16 %v1246_v12, %v1241_v11  ;;  %v1336_v37 = vpack.c.bf16 %v1256_v14, %v1251_v13  ;;  %s948_s21 = sshll.u32 %s1148_s19, 7  ;;  %s1148_s19 = sphi %s1297_s19, %s233_s19   ;;  %v1144_v20 = vphi %v1295_v20, %v1819_v20   ;;  %v1140_v19 = vphi %v1293_v19, %v1818_v19  }
  0x16   : >> { %v1810_v3 = vld [vmem:[#allocation5_spill] sm:$0xff]  ;;  %v1813_v2 = vld [vmem:[#allocation4_spill] sm:$0xff]  ;;  %v1340_v38 = vpack.c.bf16 %v1271_v16, %v1266_v15  ;;  %v1348_v41 = vpack.c.bf16 %v1291_v18, %v1276_v17  ;;  %s1762_s22 = scalar_lea.vmem %s1261_s27, %s948_s21  ;;  %s233_s19 = sadd.s32 1, %s1148_s19  }
  0x17   : >> { %v1814_v4 = vld [vmem:[#allocation6_spill] sm:$0xff]  ;;  %v1815_v5 = vld [vmem:[#allocation7_spill] sm:$0xff]  ;;  %s1316_s20 = scalar_lea.vmem %s1281_s11, %s943_s17  ;;  %v260_v25 = vshrl.u32 %v259_v23, 7  ;;  %p230_p4 = scmp.ge.s32.totalorder %s233_s19, 2  }
  0x18   : >> { %v1037_v21 = vpack.c.bf16 %v1814_v4, %v1813_v2  ;;  %v1816_v6 = vld [vmem:[#allocation8_spill] sm:$0xff]  ;;  %v1817_v7 = vld [vmem:[#allocation9_spill] sm:$0xff]  ;;  %v239_v29 = vld [vmem:[%s1316_s20] sm:$0xff] }
  0x19   : >> { %v1041_v22 = vpack.c.bf16 %v1816_v6, %v1815_v5  ;;  %v1045_v24 = vpack.c.bf16 %v1226_v8, %v1817_v7  ;;  %v261_v26 = vsub.s32 0, %v260_v25  ;;  %v373_v27 = vsub.s32 1, %v260_v25  ;;  %v241_v30 = vld [vmem:[%s1316_s20 + $0x18] sm:$0xff]  ;;  %v243_v32 = vld [vmem:[%s1316_s20 + $0x30] sm:$0xff]  ;;  %v351_v39 = vld [vmem:[%s1316_s20 + $0x1] sm:$0xff] }
  0x1a   : >> { %1038 = vmatprep.subr.bf16.mxu0 %v1037_v21  ;;  %1069 = vmatprep.subr.bf16.mxu1 %v1037_v21  ;;  %v501_v31 = vsub.s32 2, %v260_v25  ;;  %v353_v46 = vld [vmem:[%s1316_s20 + $0x19] sm:$0xff]  ;;  %v355_v51 = vld [vmem:[%s1316_s20 + $0x31] sm:$0xff]  ;;  %v240_v53 = vld [vmem:[%s1316_s20 + $0x8] sm:$0xff] }
  0x1b   : >> { %1040 = vmatpush3.bf16.msra.mxu0 %v1037_v21  ;;  %1077 = vmatpush3.bf16.msra.mxu1 %v1037_v21  ;;  %v1324_v33 = vrot.slane %v1812_v0, %v261_v26  ;;  %v1327_v34 = vrot.slane %v1811_v1, %v261_v26  ;;  %v1330_v35 = vrot.slane %v1810_v3, %v261_v26  ;;  %v242_v54 = vld [vmem:[%s1316_s20 + $0x20] sm:$0xff]  ;;  %v1387_v21 = vld [vmem:[%s1316_s20 + $0x38] sm:$0xff] }
  0x1c   : >> { %1042 = vmatprep.subr.bf16.mxu0 %v1041_v22  ;;  %1070 = vmatprep.subr.bf16.mxu1 %v1041_v22  ;;  %v1344_v40 = vrot.slane %v1812_v0, %v373_v27  ;;  %v1353_v44 = vrot.slane %v1811_v1, %v373_v27  ;;  %v1358_v47 = vrot.slane %v1810_v3, %v373_v27  ;;  %v479_v59 = vld [vmem:[%s1316_s20 + $0x2] sm:$0xff]  ;;  %v481_v23 = vld [vmem:[%s1316_s20 + $0x1a] sm:$0xff] }
  0x1d   : >> { %v263_v42 = vmul.f32 %v1324_v33, %v239_v29  ;;  %v283_v43 = vmul.f32 %v1327_v34, %v241_v30  ;;  %v319_v45 = vmul.f32 %v1330_v35, %v243_v32  ;;  %v1361_v48 = vrot.slane %v1812_v0, %v501_v31  ;;  %v1459_v4 = vld [vmem:[%s1316_s20 + $0x60] sm:$0xff] }
  0x1e   : >> { %v265_v49 = vmul.f32 %v1324_v33, %v241_v30  ;;  %v375_v52 = vmul.f32 %v1344_v40, %v351_v39  ;;  %v1369_v55 = vmul.f32 %v1324_v33, %v243_v32  ;;  %v285_v56 = vmul.f32 %v1327_v34, %v243_v32  ;;  %v483_v30 = vld [vmem:[%s1316_s20 + $0x32] sm:$0xff] }
  0x1f   : >> { %1044 = vmatpush3.bf16.msra.mxu0 %v1041_v22  ;;  %1078 = vmatpush3.bf16.msra.mxu1 %v1041_v22  ;;  %v299_v50 = vadd.f32 %v283_v43, %v263_v42  ;;  %v1373_v57 = vmul.f32 %v1344_v40, %v353_v46  ;;  %v1376_v58 = vmul.f32 %v1344_v40, %v355_v51  ;;  %v352_v22 = vld [vmem:[%s1316_s20 + $0x9] sm:$0xff] }
  0x20   : >> { %1046 = vmatprep.subr.bf16.mxu0 %v1045_v24  ;;  %1071 = vmatprep.subr.bf16.mxu1 %v1045_v24  ;;  %v411_v61 = vmul.f32 %v1353_v44, %v353_v46  ;;  %v1381_v62 = vmul.f32 %v1353_v44, %v355_v51  ;;  %v1384_v63 = vrot.slane %v1811_v1, %v501_v31  ;;  %v1431_v1 = vld [vmem:[%s1316_s20 + $0x49] sm:$0xff] }
  0x21   : >> { %v335_v60 = vadd.f32 %v319_v45, %v299_v50  ;;  %v264_v25 = vmul.f32 %v1324_v33, %v240_v53  ;;  %v284_v26 = vmul.f32 %v1327_v34, %v242_v54  ;;  %v447_v29 = vmul.f32 %v1358_v47, %v355_v51  ;;  %v1407_v45 = vld [vmem:[%s1316_s20 + $0x48] sm:$0xff]  ;;  %v1417_v53 = vld [vmem:[%s1316_s20 + $0x39] sm:$0xff] }
  0x22   : >> { %v503_v32 = vmul.f32 %v1361_v48, %v479_v59  ;;  %v1401_v39 = vmul.f32 %v1361_v48, %v481_v23  ;;  %v320_v42 = vmul.f32 %v1330_v35, %v1387_v21  ;;  %v376_v43 = vmul.f32 %v1344_v40, %v352_v22  ;;  %v480_v59 = vld [vmem:[%s1316_s20 + $0xa] sm:$0xff] }
  0x23   : >> { %1048 = vmatpush3.bf16.msra.mxu0 %v1045_v24  ;;  %1079 = vmatpush3.bf16.msra.mxu1 %v1045_v24  ;;  %v1392_v24 = vrot.slane %v1810_v3, %v501_v31  ;;  %v391_v27 = vadd.f32 %v375_v52, %v335_v60  ;;  %v300_v31 = vadd.f32 %v284_v26, %v264_v25  ;;  %v1423_v25 = vld [vmem:[%s1316_s20 + $0x50] sm:$0xff]  ;;  %v482_v26 = vld [vmem:[%s1316_s20 + $0x22] sm:$0xff] }
  0x24   : >> { %1050 = vmatprep.subr.bf16.mxu0 %v1049_v28  ;;  %1072 = vmatprep.subr.bf16.mxu1 %v1049_v28  ;;  %v1410_v50 = vmul.f32 %v1361_v48, %v483_v30  ;;  %v539_v51 = vmul.f32 %v1384_v63, %v481_v23  ;;  %v1414_v52 = vmul.f32 %v1384_v63, %v483_v30 }
  0x25   : >> { %v427_v46 = vadd.f32 %v411_v61, %v391_v27  ;;  %v575_v60 = vmul.f32 %v1392_v24, %v483_v30  ;;  %v336_v22 = vadd.f32 %v320_v42, %v300_v31  ;;  %v301_v27 = vadd.f32 %v285_v56, %v265_v49  ;;  %v1441_v49 = vld [vmem:[%s1316_s20 + $0x4a] sm:$0xff] }
  0x26   : >> { %v321_v0 = vmul.f32 %v1330_v35, %v1407_v45  ;;  %v448_v30 = vmul.f32 %v1358_v47, %v1417_v53  ;;  %v504_v31 = vmul.f32 %v1361_v48, %v480_v59  ;;  %v266_v42 = vmul.f32 %v1324_v33, %v242_v54 }
  0x27   : >> { %1052 = vmatpush3.bf16.msra.mxu0 %v1049_v28  ;;  %1080 = vmatpush3.bf16.msra.mxu1 %v1049_v28  ;;  %v354_v28 = vld [vmem:[%s1316_s20 + $0x21] sm:$0xff]  ;;  %v463_v23 = vadd.f32 %v447_v29, %v427_v46  ;;  %v286_v56 = vmul.f32 %v1327_v34, %v1387_v21  ;;  %v540_v59 = vmul.f32 %v1384_v63, %v482_v26 }
  0x28   : >> { %1054 = vmatprep.subr.bf16.mxu0 %v1053_v36  ;;  %1073 = vmatprep.subr.bf16.mxu1 %v1053_v36  ;;  %v412_v61 = vmul.f32 %v1353_v44, %v354_v28  ;;  %v1438_v29 = vld [vmem:[%s1316_s20 + $0x3a] sm:$0xff]  ;;  %v337_v46 = vadd.f32 %v321_v0, %v301_v27  ;;  %v449_v54 = vmul.f32 %v1358_v47, %v1431_v1  ;;  %v1455_v27 = vld [vmem:[%s1316_s20 + $0x51] sm:$0xff] }
  0x29   : >> { %v519_v2 = vadd.f32 %v503_v32, %v463_v23  ;;  %v302_v23 = vadd.f32 %v286_v56, %v266_v42  ;;  %v378_v3 = vmul.f32 %v1344_v40, %v354_v28  ;;  %v577_v5 = vmul.f32 %v1392_v24, %v1441_v49 }
  0x2a   : >> { %v393_v32 = vadd.f32 %v1373_v57, %v337_v46  ;;  %v450_v42 = vmul.f32 %v1358_v47, %v1455_v27  ;;  %v506_v46 = vmul.f32 %v1361_v48, %v482_v26  ;;  %v323_v56 = vmul.f32 %v1330_v35, %v1459_v4 }
  0x2b   : >> { %1056 = vmatpush3.bf16.msra.mxu0 %v1053_v36  ;;  %1081 = vmatpush3.bf16.msra.mxu1 %v1053_v36  ;;  %v392_v36 = vadd.f32 %v376_v43, %v336_v22  ;;  %v322_v43 = vmul.f32 %v1330_v35, %v1423_v25  ;;  %v555_v0 = vadd.f32 %v539_v51, %v519_v2 }
  0x2c   : >> { %1058 = vmatprep.subr.bf16.mxu0 %v1336_v37  ;;  %1074 = vmatprep.subr.bf16.mxu1 %v1336_v37  ;;  %v429_v57 = vadd.f32 %v1381_v62, %v393_v32  ;;  %v287_v51 = vmul.f32 %v1327_v34, %v1407_v45  ;;  %v542_v26 = vmul.f32 %v1384_v63, %v1438_v29 }
  0x2d   : >> { %v428_v22 = vadd.f32 %v412_v61, %v392_v36  ;;  %v576_v36 = vmul.f32 %v1392_v24, %v1438_v29  ;;  %v591_v2 = vadd.f32 %v575_v60, %v555_v0  ;;  %v338_v28 = vadd.f32 %v322_v43, %v302_v23 }
  0x2e   : >> { %v465_v62 = vadd.f32 %v449_v54, %v429_v57  ;;  %v303_v43 = vadd.f32 %v287_v51, %v1369_v55  ;;  %v415_v32 = vmul.f32 %v1353_v44, %v1431_v1  ;;  %v268_v23 = vmul.f32 %v1324_v33, %v1387_v21  ;;  %v1494_v54 = vld [vmem:[%s1316_s20 + $0x52] sm:$0xff] }
  0x2f   : >> { %1060 = vmatpush3.bf16.msra.mxu0 %v1336_v37  ;;  %1082 = vmatpush3.bf16.msra.mxu1 %v1336_v37  ;;  %v464_v61 = vadd.f32 %v448_v30, %v428_v22  ;;  %v414_v37 = vmul.f32 %v1353_v44, %v1417_v53  ;;  %v394_v60 = vadd.f32 %v378_v3, %v338_v28  ;;  %v1480_v22 = vld [vmem:[%s1316_s20 + $0x61] sm:$0xff] }
  0x30   : >> { %1062 = vmatprep.subr.bf16.mxu0 %v1340_v38  ;;  %1075 = vmatprep.subr.bf16.mxu1 %v1340_v38  ;;  %v521_v3 = vadd.f32 %v1401_v39, %v465_v62  ;;  %v451_v21 = vmul.f32 %v1358_v47, %v1480_v22  ;;  %v1515_v62 = vld [vmem:[%s1316_s20 + $0x78] sm:$0xff] }
  0x31   : >> { %v520_v30 = vadd.f32 %v504_v31, %v464_v61  ;;  %1013 = vmatprep.mubr.f32.mxu0 %v591_v2  ;;  %v1483_v31 = vld [vmem:[%s1316_s20 + $0x68] sm:$0xff]  ;;  %v430_v55 = vadd.f32 %v414_v37, %v394_v60  ;;  %v339_v61 = vadd.f32 %v323_v56, %v303_v43  ;;  %v288_v2 = vmul.f32 %v1327_v34, %v1423_v25 }
  0x32   : >> { %v324_v39 = vmul.f32 %v1330_v35, %v1483_v31  ;;  %v380_v37 = vmul.f32 %v1344_v40, %v1417_v53  ;;  %v557_v57 = vadd.f32 %v1414_v52, %v521_v3  ;;  %v1512_v56 = vld [vmem:[%s1316_s20 + $0x69] sm:$0xff]  ;;  %v543_v60 = vmul.f32 %v1384_v63, %v1441_v49 }
  0x33   : >> { %1064 = vmatpush3.bf16.msra.mxu0 %v1340_v38  ;;  %v556_v0 = vadd.f32 %v540_v59, %v520_v30  ;;  %1083 = vmatpush3.bf16.msra.mxu1 %v1340_v38  ;;  %v1497_v59 = vld [vmem:[%s1316_s20 + $0x62] sm:$0xff]  ;;  %v466_v28 = vadd.f32 %v450_v42, %v430_v55  ;;  %v395_v51 = vadd.f32 %v1376_v58, %v339_v61 }
  0x34   : >> { %1066 = vmatprep.subr.bf16.mxu0 %v1348_v41  ;;  %1076 = vmatprep.subr.bf16.mxu1 %v1348_v41  ;;  %v304_v30 = vadd.f32 %v288_v2, %v268_v23  ;;  %v579_v53 = vmul.f32 %v1392_v24, %v1497_v59  ;;  %v416_v52 = vmul.f32 %v1353_v44, %v1455_v27  ;;  %v1527_v23 = vld [vmem:[%s1316_s20 + $0x6a] sm:$0xff] }
  0x35   : >> { %v592_v38 = vadd.f32 %v576_v36, %v556_v0  ;;  %v578_v36 = vmul.f32 %v1392_v24, %v1494_v54  ;;  %v593_v58 = vadd.f32 %v577_v5, %v557_v57  ;;  %v522_v42 = vadd.f32 %v506_v46, %v466_v28  ;;  %v1547_v28 = vld [vmem:[%s1316_s20 + $0x79] sm:$0xff] }
  0x36   : >> { %v431_v43 = vadd.f32 %v415_v32, %v395_v51  ;;  %v340_v0 = vadd.f32 %v324_v39, %v304_v30  ;;  %v452_v3 = vmul.f32 %v1358_v47, %v1512_v56  ;;  %v269_v55 = vmul.f32 %v1324_v33, %v1407_v45 }
  0x37   : >> { %1068 = vmatpush3.bf16.msra.mxu0 %v1348_v41  ;;  %1084 = vmatpush3.bf16.msra.mxu1 %v1348_v41  ;;  %v289_v61 = vmul.f32 %v1327_v34, %v1459_v4  ;;  %v325_v41 = vmul.f32 %v1330_v35, %v1515_v62  ;;  %v558_v5 = vadd.f32 %v542_v26, %v522_v42 }
  0x38   : >> { %v467_v46 = vadd.f32 %v451_v21, %v431_v43  ;;  %v396_v32 = vadd.f32 %v380_v37, %v340_v0  ;;  %v508_v2 = vmul.f32 %v1361_v48, %v1438_v29  ;;  %v544_v39 = vmul.f32 %v1384_v63, %v1494_v54 }
  0x39   : >> { %v580_v45 = vmul.f32 %v1392_v24, %v1527_v23  ;;  %v305_v57 = vadd.f32 %v289_v61, %v269_v55  ;;  %v381_v26 = vmul.f32 %v1344_v40, %v1431_v1  ;;  %v594_v21 = vadd.f32 %v578_v36, %v558_v5  ;;  %v1568_v55 = vld [vmem:[%s1316_s20 + $0x81] sm:$0xff] }
  0x3a   : >> { %1014 = vmatmul.mubr.f32.vlgmr.msra.gmra.mrb[0].mxu0 %v592_v38  ;;  %v1540_v38 = vld [vmem:[%s1316_s20 + $0x80] sm:$0xff]  ;;  %v523_v37 = vadd.f32 %v1410_v50, %v467_v46  ;;  %v432_v51 = vadd.f32 %v416_v52, %v396_v32  ;;  %v417_v29 = vmul.f32 %v1353_v44, %v1480_v22  ;;  %v270_v42 = vmul.f32 %v1324_v33, %v1423_v25  ;;  %v251_v46 = vld [vmem:[%s1316_s20 + $0x90] sm:$0xff] }
  0x3b   : >> { %1016 = vmatprep.mubr.f32.mxu0 %v593_v58  ;;  %v341_v30 = vadd.f32 %v325_v41, %v305_v57  ;;  %v1555_v58 = vld [vmem:[%s1316_s20 + $0x7a] sm:$0xff]  ;;  %v290_v43 = vmul.f32 %v1327_v34, %v1483_v31  ;;  %v326_v1 = vmul.f32 %v1330_v35, %v1540_v38  ;;  %v453_v52 = vmul.f32 %v1358_v47, %v1547_v28  ;;  %v1580_v57 = vld [vmem:[%s1316_s20 + $0x82] sm:$0xff] }
  0x3c   : >> { %v559_v50 = vadd.f32 %v543_v60, %v523_v37  ;;  %v468_v36 = vadd.f32 %v452_v3, %v432_v51  ;;  %v509_v0 = vmul.f32 %v1361_v48, %v1441_v49  ;;  %v545_v25 = vmul.f32 %v1384_v63, %v1497_v59 }
  0x3d   : >> { %v397_v61 = vadd.f32 %v381_v26, %v341_v30  ;;  %v306_v41 = vadd.f32 %v290_v43, %v270_v42  ;;  %v382_v5 = vmul.f32 %v1344_v40, %v1455_v27  ;;  %v581_v3 = vmul.f32 %v1392_v24, %v1555_v58 }
  0x3e   : >> { %1017 = vmatmul.mubr.f32.gmra.mrb[2].mxu0 %v594_v21  ;;  %v595_v32 = vadd.f32 %v579_v53, %v559_v50  ;;  %v524_v60 = vadd.f32 %v508_v2, %v468_v36  ;;  %v418_v49 = vmul.f32 %v1353_v44, %v1512_v56  ;;  %v454_v37 = vmul.f32 %v1358_v47, %v1568_v55 }
  0x3f   : >> { %v433_v26 = vadd.f32 %v417_v29, %v397_v61  ;;  %v342_v21 = vadd.f32 %v326_v1, %v306_v41  ;;  %v271_v27 = vmul.f32 %v1324_v33, %v1459_v4  ;;  %v510_v2 = vmul.f32 %v1361_v48, %v1494_v54  ;;  %v363_v4 = vld [vmem:[%s1316_s20 + $0x91] sm:$0xff] }
  0x40   : >> { %1019 = vmatprep.mubr.f32.mxu0 %v595_v32  ;;  %v560_v53 = vadd.f32 %v544_v39, %v524_v60  ;;  %v291_v51 = vmul.f32 %v1327_v34, %v1515_v62  ;;  %v327_v30 = vmul.f32 %v1330_v35, %v251_v46  ;;  %v546_v43 = vmul.f32 %v1384_v63, %v1527_v23  ;;  %v1606_v32 = vld [vmem:[%s1316_s20 + $0x98] sm:$0xff] }
  0x41   : >> { %v469_v42 = vadd.f32 %v453_v52, %v433_v26  ;;  %v398_v29 = vadd.f32 %v382_v5, %v342_v21  ;;  %v582_v1 = vmul.f32 %v1392_v24, %v1580_v57  ;;  %v1597_v39 = vmul.f32 %v1324_v33, %v251_v46  ;;  %v491_v21 = vld [vmem:[%s1316_s20 + $0x92] sm:$0xff] }
  0x42   : >> { %v596_v50 = vadd.f32 %v580_v45, %v560_v53  ;;  %v307_v54 = vadd.f32 %v291_v51, %v271_v27  ;;  %v383_v36 = vmul.f32 %v1344_v40, %v1480_v22  ;;  %v293_v52 = vmul.f32 %v1327_v34, %v251_v46 }
  0x43   : >> { %v525_v61 = vadd.f32 %v509_v0, %v469_v42  ;;  %v434_v41 = vadd.f32 %v418_v49, %v398_v29  ;;  %v1603_v5 = vmul.f32 %v1344_v40, %v363_v4  ;;  %v419_v60 = vmul.f32 %v1353_v44, %v1547_v28  ;;  %v1625_v29 = vld [vmem:[%s1316_s20 + $0xa8] sm:$0xff] }
  0x44   : >> { %1020 = vmatmul.mubr.f32.gmra.mrb[4].mxu0 %v596_v50  ;;  %v343_v45 = vadd.f32 %v327_v30, %v307_v54  ;;  %v421_v26 = vmul.f32 %v1353_v44, %v363_v4  ;;  %v455_v22 = vmul.f32 %v1358_v47, %v363_v4  ;;  %v511_v46 = vmul.f32 %v1361_v48, %v1497_v59  ;;  %v1633_v4 = vld [vmem:[%s1316_s20 + $0x99] sm:$0xff] }
  0x45   : >> { %v561_v0 = vadd.f32 %v545_v25, %v525_v61  ;;  %v470_v49 = vadd.f32 %v454_v37, %v434_v41  ;;  %v272_v27 = vmul.f32 %v1324_v33, %v1483_v31  ;;  %v1618_v51 = vmul.f32 %v1361_v48, %v491_v21 }
  0x46   : >> { %v399_v53 = vadd.f32 %v383_v36, %v343_v45  ;;  %v292_v30 = vmul.f32 %v1327_v34, %v1540_v38  ;;  %v328_v42 = vmul.f32 %v1330_v35, %v1606_v32  ;;  %v547_v59 = vmul.f32 %v1384_v63, %v1555_v58 }
  0x47   : >> { %v597_v25 = vadd.f32 %v581_v3, %v561_v0  ;;  %v526_v37 = vadd.f32 %v510_v2, %v470_v49  ;;  %v1630_v31 = vmul.f32 %v1384_v63, %v491_v21  ;;  %v583_v54 = vmul.f32 %v1392_v24, %v491_v21  ;;  %v1647_v21 = vld [vmem:[%s1316_s20 + $0x9a] sm:$0xff] }
  0x48   : >> { %v435_v50 = vadd.f32 %v419_v60, %v399_v53  ;;  %v308_v36 = vadd.f32 %v292_v30, %v272_v27  ;;  %v384_v61 = vmul.f32 %v1344_v40, %v1512_v56  ;;  %v420_v2 = vmul.f32 %v1353_v44, %v1568_v55  ;;  %v1655_v27 = vld [vmem:[%s1316_s20 + $0xb0] sm:$0xff] }
  0x49   : >> { %1022 = vmatprep.mubr.f32.mxu0 %v597_v25  ;;  %v562_v3 = vadd.f32 %v546_v43, %v526_v37  ;;  %v273_v41 = vmul.f32 %v1324_v33, %v1515_v62  ;;  %v329_v45 = vmul.f32 %v1330_v35, %v1625_v29  ;;  %v456_v49 = vmul.f32 %v1358_v47, %v1633_v4  ;;  %v1652_v43 = vld [vmem:[%s1316_s20 + $0xa9] sm:$0xff] }
  0x4a   : >> { %v471_v0 = vadd.f32 %v455_v22, %v435_v50  ;;  %v344_v60 = vadd.f32 %v328_v42, %v308_v36  ;;  %v512_v56 = vmul.f32 %v1361_v48, %v1527_v23  ;;  %v548_v62 = vmul.f32 %v1384_v63, %v1580_v57  ;;  %v1662_v37 = vld [vmem:[%s1316_s20 + $0xaa] sm:$0xff] }
  0x4b   : >> { %v598_v53 = vadd.f32 %v582_v1, %v562_v3  ;;  %v309_v30 = vadd.f32 %v293_v52, %v273_v41  ;;  %v385_v22 = vmul.f32 %v1344_v40, %v1547_v28  ;;  %v274_v23 = vmul.f32 %v1324_v33, %v1540_v38  ;;  %v1675_v41 = vld [vmem:[%s1316_s20 + $0xb1] sm:$0xff] }
  0x4c   : >> { %v527_v42 = vadd.f32 %v511_v46, %v471_v0  ;;  %v400_v25 = vadd.f32 %v384_v61, %v344_v60  ;;  %v294_v50 = vmul.f32 %v1327_v34, %v1606_v32  ;;  %v584_v1 = vmul.f32 %v1392_v24, %v1647_v21  ;;  %v255_v0 = vld [vmem:[%s1316_s20 + $0xc0] sm:$0xff] }
  0x4d   : >> { %1023 = vmatmul.mubr.f32.gmra.mrb[6].mxu0 %v598_v53  ;;  %v345_v36 = vadd.f32 %v329_v45, %v309_v30  ;;  %v457_v52 = vmul.f32 %v1358_v47, %v1652_v43  ;;  %v330_v28 = vmul.f32 %v1330_v35, %v1655_v27  ;;  %v386_v38 = vmul.f32 %v1344_v40, %v1568_v55 }
  0x4e   : >> { %v563_v46 = vadd.f32 %v547_v59, %v527_v42  ;;  %v436_v61 = vadd.f32 %v420_v2, %v400_v25  ;;  %v310_v3 = vadd.f32 %v294_v50, %v274_v23  ;;  %v513_v45 = vmul.f32 %v1361_v48, %v1555_v58  ;;  %v256_v50 = vld [vmem:[%s1316_s20 + $0xc8] sm:$0xff] }
  0x4f   : >> { %v401_v60 = vadd.f32 %v385_v22, %v345_v36  ;;  %v585_v53 = vmul.f32 %v1392_v24, %v1662_v37  ;;  %v422_v59 = vmul.f32 %v1353_v44, %v1633_v4  ;;  %v295_v25 = vmul.f32 %v1327_v34, %v1625_v29 }
  0x50   : >> { %v599_v2 = vadd.f32 %v583_v54, %v563_v46  ;;  %v472_v30 = vadd.f32 %v456_v49, %v436_v61  ;;  %v346_v42 = vadd.f32 %v330_v28, %v310_v3  ;;  %v458_v22 = vmul.f32 %v1358_v47, %v1675_v41  ;;  %v1695_v54 = vld [vmem:[%s1316_s20 + $0xb2] sm:$0xff]  ;;  %v367_v46 = vld [vmem:[%s1316_s20 + $0xc1] sm:$0xff] }
  0x51   : >> { %v437_v55 = vadd.f32 %v421_v26, %v401_v60  ;;  %v514_v58 = vmul.f32 %v1361_v48, %v1580_v57  ;;  %v331_v23 = vmul.f32 %v1330_v35, %v255_v0  ;;  %v550_v49 = vmul.f32 %v1384_v63, %v1647_v21 }
  0x52   : >> { %1025 = vmatprep.mubr.f32.mxu1 %v599_v2  ;;  %v528_v36 = vadd.f32 %v512_v56, %v472_v30  ;;  %v402_v6 = vadd.f32 %v386_v38, %v346_v42  ;;  %v311_v26 = vadd.f32 %v295_v25, %v1597_v39  ;;  %v423_v61 = vmul.f32 %v1353_v44, %v1652_v43  ;;  %v368_v42 = vld [vmem:[%s1316_s20 + $0xc9] sm:$0xff] }
  0x53   : >> { %v473_v28 = vadd.f32 %v457_v52, %v437_v55  ;;  %v276_v57 = vmul.f32 %v1324_v33, %v1606_v32  ;;  %v296_v56 = vmul.f32 %v1327_v34, %v1655_v27  ;;  %v332_v2 = vmul.f32 %v1330_v35, %v256_v50 }
  0x54   : >> { %v564_v3 = vadd.f32 %v548_v62, %v528_v36  ;;  %v438_v38 = vadd.f32 %v422_v59, %v402_v6  ;;  %v347_v60 = vadd.f32 %v331_v23, %v311_v26  ;;  %v586_v39 = vmul.f32 %v1392_v24, %v1695_v54  ;;  %v257_v6 = vld [vmem:[%s1316_s20 + $0xd8] sm:$0xff]  ;;  %v495_v23 = vld [vmem:[%s1316_s20 + $0xc2] sm:$0xff] }
  0x55   : >> { %v529_v30 = vadd.f32 %v513_v45, %v473_v28  ;;  %v312_v52 = vadd.f32 %v296_v56, %v276_v57  ;;  %v388_v25 = vmul.f32 %v1344_v40, %v1633_v4  ;;  %v459_v62 = vmul.f32 %v1358_v47, %v367_v46  ;;  %v496_v57 = vld [vmem:[%s1316_s20 + $0xca] sm:$0xff] }
  0x56   : >> { %v600_v55 = vadd.f32 %v584_v1, %v564_v3  ;;  %v474_v32 = vadd.f32 %v458_v22, %v438_v38  ;;  %v403_v7 = vadd.f32 %v1603_v5, %v347_v60  ;;  %v551_v45 = vmul.f32 %v1384_v63, %v1662_v37 }
  0x57   : >> { %v565_v59 = vadd.f32 %v1630_v31, %v529_v30  ;;  %v348_v36 = vadd.f32 %v332_v2, %v312_v52  ;;  %v424_v26 = vmul.f32 %v1353_v44, %v1675_v41  ;;  %v460_v22 = vmul.f32 %v1358_v47, %v368_v42  ;;  %v369_v2 = vld [vmem:[%s1316_s20 + $0xd9] sm:$0xff] }
  0x58   : >> { %1026 = vmatmul.mubr.f32.vlgmr.msra.gmra.mrb[0].mxu1 %v600_v55  ;;  %v530_v4 = vadd.f32 %v514_v58, %v474_v32  ;;  %v439_v1 = vadd.f32 %v423_v61, %v403_v7  ;;  %v277_v5 = vmul.f32 %v1324_v33, %v1625_v29  ;;  %v297_v56 = vmul.f32 %v1327_v34, %v255_v0  ;;  %v258_v30 = vld [vmem:[%s1316_s20 + $0xe0] sm:$0xff] }
  0x59   : >> { %v601_v28 = vadd.f32 %v585_v53, %v565_v59  ;;  %v404_v31 = vadd.f32 %v388_v25, %v348_v36  ;;  %v333_v3 = vmul.f32 %v1330_v35, %v257_v6  ;;  %v587_v58 = vmul.f32 %v1392_v24, %v495_v23  ;;  %v498_v36 = vld [vmem:[%s1316_s20 + $0xe2] sm:$0xff] }
  0x5a   : >> { %v566_v38 = vadd.f32 %v550_v49, %v530_v4  ;;  %v475_v60 = vadd.f32 %v459_v62, %v439_v1  ;;  %v516_v7 = vmul.f32 %v1361_v48, %v1647_v21  ;;  %v552_v29 = vmul.f32 %v1384_v63, %v1695_v54  ;;  %v370_v21 = vld [vmem:[%s1316_s20 + $0xe1] sm:$0xff] }
  0x5b   : >> { %1028 = vmatprep.mubr.f32.mxu1 %v601_v28  ;;  %v440_v61 = vadd.f32 %v424_v26, %v404_v31  ;;  %v313_v53 = vadd.f32 %v297_v56, %v277_v5  ;;  %v389_v0 = vmul.f32 %v1344_v40, %v1652_v43  ;;  %v588_v25 = vmul.f32 %v1392_v24, %v496_v57 }
  0x5c   : >> { %v602_v52 = vadd.f32 %v586_v39, %v566_v38  ;;  %v531_v49 = vadd.f32 %v1618_v51, %v475_v60  ;;  %v425_v55 = vmul.f32 %v1353_v44, %v367_v46  ;;  %v278_v6 = vmul.f32 %v1324_v33, %v1655_v27 }
  0x5d   : >> { %v476_v32 = vadd.f32 %v460_v22, %v440_v61  ;;  %v349_v62 = vadd.f32 %v333_v3, %v313_v53  ;;  %v298_v59 = vmul.f32 %v1327_v34, %v256_v50  ;;  %v461_v43 = vmul.f32 %v1358_v47, %v369_v2 }
  0x5e   : >> { %1029 = vmatmul.mubr.f32.gmra.mrb[2].mxu1 %v602_v52  ;;  %v567_v26 = vadd.f32 %v551_v45, %v531_v49  ;;  %v334_v51 = vmul.f32 %v1330_v35, %v258_v30  ;;  %v390_v39 = vmul.f32 %v1344_v40, %v1675_v41  ;;  %v462_v22 = vmul.f32 %v1358_v47, %v370_v21  ;;  %v497_v40 = vld [vmem:[%s1316_s20 + $0xda] sm:$0xff] }
  0x5f   : >> { %v532_v46 = vadd.f32 %v516_v7, %v476_v32  ;;  %v405_v4 = vadd.f32 %v389_v0, %v349_v62  ;;  %v314_v1 = vadd.f32 %v298_v59, %v278_v6  ;;  %v517_v33 = vmul.f32 %v1361_v48, %v1662_v37 }
  0x60   : >> { %v603_v5 = vadd.f32 %v587_v58, %v567_v26  ;;  %v554_v34 = vmul.f32 %v1384_v63, %v496_v57  ;;  %v590_v27 = vmul.f32 %v1392_v24, %v498_v36  ;;  %v426_v35 = vmul.f32 %v1353_v44, %v368_v42 }
  0x61   : >> { %v568_v50 = vadd.f32 %v552_v29, %v532_v46  ;;  %v441_v45 = vadd.f32 %v425_v55, %v405_v4  ;;  %v350_v28 = vadd.f32 %v334_v51, %v314_v1  ;;  %v553_v47 = vmul.f32 %v1384_v63, %v495_v23 }
  0x62   : >> { %1031 = vmatprep.mubr.f32.mxu1 %v603_v5  ;;  %v589_v57 = vmul.f32 %v1392_v24, %v497_v40  ;;  %v518_v38 = vmul.f32 %v1361_v48, %v1695_v54 }
  0x63   : >> { %v604_v41 = vadd.f32 %v588_v25, %v568_v50  ;;  %v477_v31 = vadd.f32 %v461_v43, %v441_v45  ;;  %v406_v56 = vadd.f32 %v390_v39, %v350_v28 }
  0x65   : >> { %1032 = vmatmul.mubr.f32.gmra.mrb[4].mxu1 %v604_v41  ;;  %v533_v37 = vadd.f32 %v517_v33, %v477_v31  ;;  %v442_v3 = vadd.f32 %v426_v35, %v406_v56 }
  0x67   : >> { %v569_v60 = vadd.f32 %v553_v47, %v533_v37  ;;  %v478_v58 = vadd.f32 %v462_v22, %v442_v3 }
  0x69   : >> { %v605_v44 = vadd.f32 %v589_v57, %v569_v60  ;;  %v534_v42 = vadd.f32 %v518_v38, %v478_v58 }
  0x6b   : >> { %1034 = vmatprep.mubr.f32.mxu1 %v605_v44  ;;  %v570_v7 = vadd.f32 %v554_v34, %v534_v42 }
  0x6d   : >> { %v606_v61 = vadd.f32 %v590_v27, %v570_v7 }
  0x6f   : >> { %1035 = vmatmul.mubr.f32.gmra.mrb[6].mxu1 %v606_v61 }
 0x10d   : >> { %v1015_v63 = vpop.f32.mrb[0].mxu0 }
 0x10e   : >> { %755 = vst [vmem:[%s1762_s22 + $0x8] sm:$0xff] %v1015_v63  ;;  %v793_v24 = vmul.f32 %v1015_v63, %v1015_v63  ;;  %v673_v23 = vpop.f32.mrb[1].mxu0 }
 0x10f   : >> { %754 = vst [vmem:[%s1762_s22] sm:$0xff] %v673_v23  ;;  %v770_v48 = vadd.f32 %v1015_v63, %v673_v23  ;;  %v792_v54 = vmul.f32 %v673_v23, %v673_v23 }
 0x111   : >> { %v808_v29 = vadd.f32 %v793_v24, %v792_v54  ;;  %v1018_v53 = vpop.f32.mrb[2].mxu0 }
 0x112   : >> { %757 = vst [vmem:[%s1762_s22 + $0x18] sm:$0xff] %v1018_v53  ;;  %v683_v2 = vpop.f32.mrb[3].mxu0  ;;  %v795_v52 = vmul.f32 %v1018_v53, %v1018_v53 }
 0x113   : >> { %756 = vst [vmem:[%s1762_s22 + $0x10] sm:$0xff] %v683_v2  ;;  %v771_v0 = vadd.f32 %v770_v48, %v683_v2  ;;  %v794_v30 = vmul.f32 %v683_v2, %v683_v2 }
 0x115   : >> { %v809_v49 = vadd.f32 %v808_v29, %v794_v30  ;;  %v772_v25 = vadd.f32 %v1018_v53, %v771_v0 }
 0x117   : >> { %v810_v55 = vadd.f32 %v809_v49, %v795_v52  ;;  %v1021_v21 = vpop.f32.mrb[4].mxu0 }
 0x118   : >> { %759 = vst [vmem:[%s1762_s22 + $0x28] sm:$0xff] %v1021_v21  ;;  %v693_v32 = vpop.f32.mrb[5].mxu0  ;;  %v797_v59 = vmul.f32 %v1021_v21, %v1021_v21 }
 0x119   : >> { %758 = vst [vmem:[%s1762_s22 + $0x20] sm:$0xff] %v693_v32  ;;  %v773_v62 = vadd.f32 %v772_v25, %v693_v32  ;;  %v796_v6 = vmul.f32 %v693_v32, %v693_v32 }
 0x11b   : >> { %v811_v36 = vadd.f32 %v810_v55, %v796_v6  ;;  %v774_v26 = vadd.f32 %v1021_v21, %v773_v62 }
 0x11d   : >> { %v812_v43 = vadd.f32 %v811_v36, %v797_v59 }
 0x120   : >> { %v1024_v51 = vpop.f32.mrb[6].mxu0 }
 0x121   : >> { %761 = vst [vmem:[%s1762_s22 + $0x38] sm:$0xff] %v1024_v51  ;;  %v703_v39 = vpop.f32.mrb[7].mxu0  ;;  %v799_v1 = vmul.f32 %v1024_v51, %v1024_v51 }
 0x122   : >> { %760 = vst [vmem:[%s1762_s22 + $0x30] sm:$0xff] %v703_v39  ;;  %v775_v46 = vadd.f32 %v774_v26, %v703_v39  ;;  %v798_v4 = vmul.f32 %v703_v39, %v703_v39 }
 0x124   : >> { %v776_v22 = vadd.f32 %v1024_v51, %v775_v46  ;;  %v813_v5 = vadd.f32 %v812_v43, %v798_v4 }
 0x126   : >> { %v814_v33 = vadd.f32 %v813_v5, %v799_v1 }
 0x12b   : >> { %v1027_v34 = vpop.f32.mrb[0].mxu1 }
 0x12c   : >> { %763 = vst [vmem:[%s1762_s22 + $0x48] sm:$0xff] %v1027_v34  ;;  %v713_v27 = vpop.f32.mrb[1].mxu1  ;;  %v801_v28 = vmul.f32 %v1027_v34, %v1027_v34 }
 0x12d   : >> { %762 = vst [vmem:[%s1762_s22 + $0x40] sm:$0xff] %v713_v27  ;;  %v777_v50 = vadd.f32 %v776_v22, %v713_v27  ;;  %v800_v45 = vmul.f32 %v713_v27, %v713_v27 }
 0x12f   : >> { %v815_v35 = vadd.f32 %v814_v33, %v800_v45  ;;  %v778_v40 = vadd.f32 %v1027_v34, %v777_v50 }
 0x131   : >> { %v1030_v41 = vpop.f32.mrb[2].mxu1  ;;  %v816_v31 = vadd.f32 %v815_v35, %v801_v28 }
 0x132   : >> { %765 = vst [vmem:[%s1762_s22 + $0x58] sm:$0xff] %v1030_v41  ;;  %v723_v47 = vpop.f32.mrb[3].mxu1  ;;  %v803_v57 = vmul.f32 %v1030_v41, %v1030_v41 }
 0x133   : >> { %764 = vst [vmem:[%s1762_s22 + $0x50] sm:$0xff] %v723_v47  ;;  %v779_v56 = vadd.f32 %v778_v40, %v723_v47  ;;  %v802_v37 = vmul.f32 %v723_v47, %v723_v47 }
 0x135   : >> { %v817_v3 = vadd.f32 %v816_v31, %v802_v37  ;;  %v780_v38 = vadd.f32 %v1030_v41, %v779_v56 }
 0x137   : >> { %v818_v60 = vadd.f32 %v817_v3, %v803_v57 }
 0x138   : >> { %v1033_v58 = vpop.f32.mrb[4].mxu1 }
 0x139   : >> { %767 = vst [vmem:[%s1762_s22 + $0x68] sm:$0xff] %v1033_v58  ;;  %v733_v44 = vpop.f32.mrb[5].mxu1  ;;  %v805_v61 = vmul.f32 %v1033_v58, %v1033_v58 }
 0x13a   : >> { %766 = vst [vmem:[%s1762_s22 + $0x60] sm:$0xff] %v733_v44  ;;  %v781_v42 = vadd.f32 %v780_v38, %v733_v44  ;;  %v804_v7 = vmul.f32 %v733_v44, %v733_v44 }
 0x13c   : >> { %v819_v63 = vadd.f32 %v818_v60, %v804_v7  ;;  %v782_v24 = vadd.f32 %v1033_v58, %v781_v42 }
 0x13e   : >> { %v820_v23 = vadd.f32 %v819_v63, %v805_v61 }
 0x142   : >> { %v1036_v48 = vpop.f32.mrb[6].mxu1 }
 0x143   : >> { %769 = vst [vmem:[%s1762_s22 + $0x78] sm:$0xff] %v1036_v48  ;;  %v743_v54 = vpop.f32.mrb[7].mxu1  ;;  %v807_v2 = vmul.f32 %v1036_v48, %v1036_v48 }
 0x144   : >> { %768 = vst [vmem:[%s1762_s22 + $0x70] sm:$0xff] %v743_v54  ;;  %v783_v29 = vadd.f32 %v782_v24, %v743_v54  ;;  %v806_v53 = vmul.f32 %v743_v54, %v743_v54 }
 0x146   : >> { %v784_v0 = vadd.f32 %v1036_v48, %v783_v29  ;;  %v821_v30 = vadd.f32 %v820_v23, %v806_v53 }
 0x148   : >> { %v785_v52 = vrot.slane %v784_v0, 4  ;;  %v822_v49 = vadd.f32 %v821_v30, %v807_v2 }
 0x14a   : >> { %v786_v25 = vadd.f32 %v785_v52, %v784_v0  ;;  %v823_v55 = vrot.slane %v822_v49, 4 }
 0x14c   : >> { %v787_v21 = vrot.slane %v786_v25, 2  ;;  %v824_v32 = vadd.f32 %v823_v55, %v822_v49 }
 0x14e   : >> { %v788_v62 = vadd.f32 %v787_v21, %v786_v25  ;;  %v825_v6 = vrot.slane %v824_v32, 2 }
 0x150   : >> { %v789_v59 = vrot.slane %v788_v62, 1  ;;  %v826_v36 = vadd.f32 %v825_v6, %v824_v32 }
 0x152   : >> { %v790_v26 = vadd.f32 %v789_v59, %v788_v62  ;;  %v827_v43 = vrot.slane %v826_v36, 1  ;;  %232 = sbr.rel (!%p230_p4) target bundleno = 21 (0x15), region = 83 }
 0x154   : >> { %v791_v51 = vadd.f32 %v1144_v20, %v790_v26   ;;  %v828_v39 = vadd.f32 %v827_v43, %v826_v36 }
 0x156   : >> { %v829_v46 = vadd.f32 %v1140_v19, %v828_v39   ;;  %v1819_v20 = vmov %v791_v51  ;;  %830 = vst [vmem:[%s1286_s13] sm:$0x1] (%p230_p4), %v791_v51 }
 0x158   : >> { %v1818_v19 = vmov %v829_v46  ;;  %831 = vst [vmem:[%s1286_s13 + $0x1] sm:$0x1] (%p230_p4), %v829_v46 }
 0x159 PF: > { %s15_s15 = sadd.s32 1, %s1136_s15  }
 0x15a   : > { %p12_p5 = scmp.ge.s32.totalorder %s15_s15, 4  }
 0x15c   :  { %14 = sbr.rel (!%p12_p5) target bundleno = 1 (0x1), region = 94 }

// kernel: depth_double_conv.3
= control target key start
LH: loop header
LB: loop body
LE: loop exit
PB: predicated region body
PF: predicated region fallthrough
CT: control target
= control target key end

     0   :  { %s1525_s21 = smov 0   ;;  %s2253_s0 = inlined_call_operand.vmem [shape: f32[2,16,16,128], index: 0, kind: input, shape index: {}, may-alias: {0,5}]   ;;  %s2254_s1 = inlined_call_operand.vmem [shape: f32[1,128], index: 1, kind: input, shape index: {}]   ;;  %s2255_s2 = inlined_call_operand.vmem [shape: f32[1,128], index: 2, kind: input, shape index: {}]   ;;  %s2256_s3 = inlined_call_operand.vmem [shape: f32[3,3,128], index: 3, kind: input, shape index: {}]   ;;  %s2257_s4 = inlined_call_operand.vmem [shape: f32[128,128], index: 4, kind: input, shape index: {}]   ;;  %s2258_s5 = inlined_call_operand.vmem [shape: f32[2,16,16,128], index: 5, kind: output, shape index: {0}, may-alias: {0,5}]   ;;  %s2259_s6 = inlined_call_operand.vmem [shape: f32[2,2,128], index: 6, kind: output, shape index: {1}]  }
   0x1 LB: > { %s1267_s22 = sadd.s32 4294967295, %s1475_s21   ;;  %p1271_p0 = scmp.ge.s32.totalorder %s1475_s21, 1  ;;  %s1475_s21 = sphi %s1525_s21, %s17_s21  }
   0x2   : > { %p215_p1 = scmp.lt.s32.totalorder %s1475_s21, 3 }
   0x4   : > { %p216_p2 = pnand %p1271_p0, %p215_p1 }
   0x6   : > { %219 = sbr.rel (%p216_p2) target bundleno = 393 (0x189), region = 40 }
   0xd   : > { %v1536_v0 = vld [vmem:[%s2256_s3] sm:$0x7]  ;;  %v1541_v1 = vld [vmem:[%s2256_s3 + $0x4] sm:$0x7]  ;;  %v1489_v3 = vmov 0.0   ;;  %v1556_v5 = vld [vmem:[%s2257_s4 + $0x8] sm:$0xff] }
   0xe   : > { %2263 = vst [vmem:[#allocation3_spill] sm:$0xff] %v1536_v0  ;;  %2264 = vst [vmem:[#allocation4_spill] sm:$0xff] %v1541_v1  ;;  %v1546_v2 = vld [vmem:[%s2257_s4] sm:$0xff]  ;;  %v1551_v4 = vld [vmem:[%s2256_s3 + $0x8] sm:$0x7]  ;;  %p249_p3 = scmp.lt.s32.totalorder %s1267_s22, 1 }
   0xf   : > { %2265 = vst [vmem:[#allocation5_spill] sm:$0xff] %v1546_v2  ;;  %263 = vst [vmem:[#allocation2] sm:$0xff] %v1489_v3  ;;  %v1561_v6 = vld [vmem:[%s2257_s4 + $0x10] sm:$0xff]  ;;  %v1568_v7 = vld [vmem:[%s2257_s4 + $0x18] sm:$0xff]  ;;  %s1757_s7 = smov 0  }
  0x10   : > { %264 = vst [vmem:[#allocation2 + $0x20] sm:$0xff] %v1489_v3  ;;  %265 = vst [vmem:[#allocation2 + $0x40] sm:$0xff] %v1489_v3  ;;  %v1573_v8 = vld [vmem:[%s2257_s4 + $0x20] sm:$0xff]  ;;  %v1578_v9 = vld [vmem:[%s2257_s4 + $0x28] sm:$0xff]  ;;  %s2282_s22 = smov (!%p249_p3, %s1267_s22), 1 }
  0x11   : > { %266 = vst [vmem:[#allocation2 + $0x60] sm:$0xff] %v1489_v3  ;;  %267 = vst [vmem:[#allocation2 + $0x80] sm:$0xff] %v1489_v3  ;;  %v1583_v10 = vld [vmem:[%s2257_s4 + $0x30] sm:$0xff]  ;;  %v1588_v11 = vld [vmem:[%s2257_s4 + $0x38] sm:$0xff]  ;;  %s1284_s13 = sshll.u32 %s2282_s22, 8  ;;  %s1276_s14 = sshll.u32 %s2282_s22, 1 }
  0x12   : > { %268 = vst [vmem:[#allocation2 + $0xa0] sm:$0xff] %v1489_v3  ;;  %269 = vst [vmem:[#allocation2 + $0xc0] sm:$0xff] %v1489_v3  ;;  %v1593_v12 = vld [vmem:[%s2257_s4 + $0x40] sm:$0xff]  ;;  %v1600_v13 = vld [vmem:[%s2257_s4 + $0x48] sm:$0xff]  ;;  %s1635_s19 = scalar_lea.vmem %s2253_s0, %s1284_s13  ;;  %s1640_s22 = scalar_lea.vmem %s2258_s5, %s1284_s13 }
  0x13   : > { %270 = vst [vmem:[#allocation2 + $0xe0] sm:$0xff] %v1489_v3  ;;  %271 = vst [vmem:[#allocation2 + $0x100] sm:$0xff] %v1489_v3  ;;  %v1605_v14 = vld [vmem:[%s2257_s4 + $0x50] sm:$0xff]  ;;  %v1610_v15 = vld [vmem:[%s2257_s4 + $0x58] sm:$0xff]  ;;  %s1655_s30 = scalar_lea.vmem %s2259_s6, %s1276_s14 }
  0x14   : > { %272 = vst [vmem:[#allocation2 + $0x120] sm:$0xff] %v1489_v3  ;;  %273 = vst [vmem:[#allocation2 + $0x140] sm:$0xff] %v1489_v3  ;;  %v1615_v16 = vld [vmem:[%s2257_s4 + $0x60] sm:$0xff]  ;;  %v1620_v17 = vld [vmem:[%s2257_s4 + $0x68] sm:$0xff] }
  0x15   : > { %274 = vst [vmem:[#allocation2 + $0x160] sm:$0xff] %v1489_v3  ;;  %275 = vst [vmem:[#allocation2 + $0x180] sm:$0xff] %v1489_v3  ;;  %v1625_v18 = vld [vmem:[%s2257_s4 + $0x70] sm:$0xff]  ;;  %v1630_v19 = vld [vmem:[%s2257_s4 + $0x78] sm:$0xff] }
  0x16   : > { %276 = vst [vmem:[#allocation2 + $0x1a0] sm:$0xff] %v1489_v3  ;;  %277 = vst [vmem:[#allocation2 + $0x1c0] sm:$0xff] %v1489_v3  ;;  %v1645_v20 = vld [vmem:[%s2254_s1] ss:$0 sm:$0xff]  ;;  %v305_v23 = vld [vmem:[%s1635_s19 + $0x8] sm:$0xff] }
  0x17   : > { %278 = vst [vmem:[#allocation2 + $0x1e0] sm:$0xff] %v1489_v3  ;;  %279 = vst [vmem:[#allocation2 + $0x200] sm:$0xff] %v1489_v3  ;;  %v1650_v21 = vld [vmem:[%s2255_s2] ss:$0 sm:$0xff]  ;;  %v306_v24 = vld [vmem:[%s1635_s19 + $0x10] sm:$0xff]  ;;  %v344_v26 = vmul.f32 %v1645_v20, %v305_v23 }
  0x18   : > { %280 = vst [vmem:[#allocation2 + $0x220] sm:$0xff] %v1489_v3  ;;  %281 = vst [vmem:[#allocation2 + $0x18] sm:$0xff] %v1489_v3  ;;  %v304_v22 = vld [vmem:[%s1635_s19] sm:$0xff]  ;;  %v345_v27 = vmul.f32 %v1645_v20, %v306_v24  ;;  %v307_v28 = vld [vmem:[%s1635_s19 + $0x18] sm:$0xff] }
  0x19   : > { %282 = vst [vmem:[#allocation2 + $0x38] sm:$0xff] %v1489_v3  ;;  %283 = vst [vmem:[#allocation2 + $0x58] sm:$0xff] %v1489_v3  ;;  %v343_v25 = vmul.f32 %v1645_v20, %v304_v22  ;;  %v308_v29 = vld [vmem:[%s1635_s19 + $0x20] sm:$0xff]  ;;  %v309_v30 = vld [vmem:[%s1635_s19 + $0x28] sm:$0xff]  ;;  %v346_v31 = vmul.f32 %v1645_v20, %v307_v28  ;;  %v383_v37 = vadd.f32 %v1650_v21, %v344_v26 }
  0x1a   : > { %284 = vst [vmem:[#allocation2 + $0x78] sm:$0xff] %v1489_v3  ;;  %285 = vst [vmem:[#allocation2 + $0x98] sm:$0xff] %v1489_v3  ;;  %v347_v32 = vmul.f32 %v1645_v20, %v308_v29  ;;  %v348_v33 = vmul.f32 %v1645_v20, %v309_v30  ;;  %v310_v34 = vld [vmem:[%s1635_s19 + $0x30] sm:$0xff]  ;;  %v311_v35 = vld [vmem:[%s1635_s19 + $0x38] sm:$0xff]  ;;  %v384_v38 = vadd.f32 %v1650_v21, %v345_v27 }
  0x1b   : > { %286 = vst [vmem:[#allocation2 + $0xb8] sm:$0xff] %v1489_v3  ;;  %287 = vst [vmem:[#allocation2 + $0xd8] sm:$0xff] %v1489_v3  ;;  %v382_v36 = vadd.f32 %v1650_v21, %v343_v25  ;;  %v349_v39 = vmul.f32 %v1645_v20, %v310_v34  ;;  %v385_v40 = vadd.f32 %v1650_v21, %v346_v31  ;;  %v312_v44 = vld [vmem:[%s1635_s19 + $0x40] sm:$0xff]  ;;  %vm415_vm1 = vcmp.gt.f32.partialorder %v383_v37, 0.0  ;;  %v313_v52 = vld [vmem:[%s1635_s19 + $0x48] sm:$0xff] }
  0x1c   : > { %288 = vst [vmem:[#allocation2 + $0xf8] sm:$0xff] %v1489_v3  ;;  %289 = vst [vmem:[#allocation2 + $0x118] sm:$0xff] %v1489_v3  ;;  %v386_v41 = vadd.f32 %v1650_v21, %v347_v32  ;;  %v387_v42 = vadd.f32 %v1650_v21, %v348_v33  ;;  %v350_v43 = vmul.f32 %v1645_v20, %v311_v35  ;;  %v447_v46 = vmul.f32 0.01, %v383_v37  ;;  %v314_v53 = vld [vmem:[%s1635_s19 + $0x50] sm:$0xff]  ;;  %v315_v54 = vld [vmem:[%s1635_s19 + $0x58] sm:$0xff] }
  0x1d   : > { %290 = vst [vmem:[#allocation2 + $0x138] sm:$0xff] %v1489_v3  ;;  %291 = vst [vmem:[#allocation2 + $0x158] sm:$0xff] %v1489_v3  ;;  %vm414_vm0 = vcmp.gt.f32.partialorder %v382_v36, 0.0  ;;  %v446_v45 = vmul.f32 0.01, %v382_v36  ;;  %vm416_vm2 = vcmp.gt.f32.partialorder %v384_v38, 0.0  ;;  %v388_v59 = vadd.f32 %v1650_v21, %v349_v39 }
  0x1e   : > { %292 = vst [vmem:[#allocation2 + $0x178] sm:$0xff] %v1489_v3  ;;  %293 = vst [vmem:[#allocation2 + $0x198] sm:$0xff] %v1489_v3  ;;  %v448_v47 = vmul.f32 0.01, %v384_v38  ;;  %vm417_vm3 = vcmp.gt.f32.partialorder %v385_v40, 0.0  ;;  %v479_v50 = vsel %vm415_vm1, %v383_v37, %v447_v46  ;;  %vm418_vm4 = vcmp.gt.f32.partialorder %v386_v41, 0.0 }
  0x1f   : > { %294 = vst [vmem:[#allocation2 + $0x1b8] sm:$0xff] %v1489_v3  ;;  %295 = vst [vmem:[#allocation2 + $0x1d8] sm:$0xff] %v1489_v3  ;;  %v449_v48 = vmul.f32 0.01, %v385_v40  ;;  %v478_v49 = vsel %vm414_vm0, %v382_v36, %v446_v45  ;;  %v450_v51 = vmul.f32 0.01, %v386_v41  ;;  %v389_v60 = vadd.f32 %v1650_v21, %v350_v43 }
  0x20   : > { %296 = vst [vmem:[#allocation2 + $0x1f8] sm:$0xff] %v1489_v3  ;;  %297 = vst [vmem:[#allocation2 + $0x218] sm:$0xff] %v1489_v3  ;;  %v480_v55 = vsel %vm416_vm2, %v384_v38, %v448_v47  ;;  %vm419_vm5 = vcmp.gt.f32.partialorder %v387_v42, 0.0  ;;  %v451_v57 = vmul.f32 0.01, %v387_v42  ;;  %v351_v61 = vmul.f32 %v1645_v20, %v312_v44  ;;  %v316_v23 = vld [vmem:[%s1635_s19 + $0x60] sm:$0xff] }
  0x21   : > { %298 = vst [vmem:[#allocation2 + $0x238] sm:$0xff] %v1489_v3  ;;  %299 = vst [vmem:[#allocation2 + $0x8] sm:$0xff] %v1489_v3  ;;  %v481_v56 = vsel %vm417_vm3, %v385_v40, %v449_v48  ;;  %v482_v58 = vsel %vm418_vm4, %v386_v41, %v450_v51  ;;  %v352_v63 = vmul.f32 %v1645_v20, %v313_v52  ;;  %v317_v24 = vld [vmem:[%s1635_s19 + $0x68] sm:$0xff]  ;;  %vm420_vm6 = vcmp.gt.f32.partialorder %v388_v59, 0.0  ;;  %v318_v35 = vld [vmem:[%s1635_s19 + $0x70] sm:$0xff] }
  0x22   : > { %300 = vst [vmem:[#allocation2 + $0x10] sm:$0xff] %v1489_v3  ;;  %302 = vst [vmem:[#allocation2 + $0x228] sm:$0xff] %v1489_v3  ;;  %v483_v62 = vsel %vm419_vm5, %v387_v42, %v451_v57  ;;  %v354_v22 = vmul.f32 %v1645_v20, %v315_v54  ;;  %v452_v25 = vmul.f32 0.01, %v388_v59  ;;  %vm421_vm7 = vcmp.gt.f32.partialorder %v389_v60, 0.0  ;;  %v319_v36 = vld [vmem:[%s1635_s19 + $0x78] sm:$0xff] }
  0x23   : > { %303 = vst [vmem:[#allocation2 + $0x230] sm:$0xff] %v1489_v3  ;;  %2266 = vst [vmem:[#allocation6_spill] sm:$0xff] %v1551_v4  ;;  %v353_v3 = vmul.f32 %v1645_v20, %v314_v53  ;;  %v453_v26 = vmul.f32 0.01, %v389_v60  ;;  %v390_v27 = vadd.f32 %v1650_v21, %v351_v61  ;;  %v391_v28 = vadd.f32 %v1650_v21, %v352_v63  ;;  %v320_v45 = vld [vmem:[%s1635_s19 + $0x80] sm:$0xff]  ;;  %v321_v46 = vld [vmem:[%s1635_s19 + $0x88] sm:$0xff] }
  0x24   : > { %2267 = vst [vmem:[#allocation7_spill] sm:$0xff] %v1556_v5  ;;  %2268 = vst [vmem:[#allocation8_spill] sm:$0xff] %v1561_v6  ;;  %v393_v30 = vadd.f32 %v1650_v21, %v354_v22  ;;  %v484_v31 = vsel %vm420_vm6, %v388_v59, %v452_v25  ;;  %v355_v33 = vmul.f32 %v1645_v20, %v316_v23  ;;  %v322_v51 = vld [vmem:[%s1635_s19 + $0x90] sm:$0xff]  ;;  %v323_v52 = vld [vmem:[%s1635_s19 + $0x98] sm:$0xff] }
  0x25   : > { %2269 = vst [vmem:[#allocation9_spill] sm:$0xff] %v1568_v7  ;;  %2270 = vst [vmem:[#allocation10_spill] sm:$0xff] %v1573_v8  ;;  %v392_v29 = vadd.f32 %v1650_v21, %v353_v3  ;;  %v485_v32 = vsel %vm421_vm7, %v389_v60, %v453_v26  ;;  %v356_v34 = vmul.f32 %v1645_v20, %v317_v24  ;;  %vm422_vm8 = vcmp.gt.f32.partialorder %v390_v27, 0.0  ;;  %v324_v63 = vld [vmem:[%s1635_s19 + $0xa0] sm:$0xff]  ;;  %v325_v3 = vld [vmem:[%s1635_s19 + $0xa8] sm:$0xff] }
  0x26   : > { %511 = vst [vmem:[#allocation2 + $0x28] sm:$0xff] %v478_v49  ;;  %512 = vst [vmem:[#allocation2 + $0x30] sm:$0xff] %v479_v50  ;;  %v454_v37 = vmul.f32 0.01, %v390_v27  ;;  %vm423_vm9 = vcmp.gt.f32.partialorder %v391_v28, 0.0  ;;  %vm425_vm11 = vcmp.gt.f32.partialorder %v393_v30, 0.0  ;;  %v394_v43 = vadd.f32 %v1650_v21, %v355_v33 }
  0x27   : > { %513 = vst [vmem:[#allocation2 + $0x48] sm:$0xff] %v480_v55  ;;  %514 = vst [vmem:[#allocation2 + $0x50] sm:$0xff] %v481_v56  ;;  %v455_v38 = vmul.f32 0.01, %v391_v28  ;;  %vm424_vm10 = vcmp.gt.f32.partialorder %v392_v29, 0.0  ;;  %v395_v44 = vadd.f32 %v1650_v21, %v356_v34  ;;  %v357_v49 = vmul.f32 %v1645_v20, %v318_v35  ;;  %v327_v33 = vld [vmem:[%s1635_s19 + $0xb8] sm:$0xff] }
  0x28   : > { %515 = vst [vmem:[#allocation2 + $0x68] sm:$0xff] %v482_v58  ;;  %516 = vst [vmem:[#allocation2 + $0x70] sm:$0xff] %v483_v62  ;;  %v456_v39 = vmul.f32 0.01, %v392_v29  ;;  %v457_v40 = vmul.f32 0.01, %v393_v30  ;;  %v486_v41 = vsel %vm422_vm8, %v390_v27, %v454_v37  ;;  %v358_v50 = vmul.f32 %v1645_v20, %v319_v36 }
  0x29   : > { %517 = vst [vmem:[#allocation2 + $0x88] sm:$0xff] %v484_v31  ;;  %518 = vst [vmem:[#allocation2 + $0x90] sm:$0xff] %v485_v32  ;;  %v487_v42 = vsel %vm423_vm9, %v391_v28, %v455_v38  ;;  %vm426_vm12 = vcmp.gt.f32.partialorder %v394_v43, 0.0  ;;  %v458_v53 = vmul.f32 0.01, %v394_v43  ;;  %vm427_vm13 = vcmp.gt.f32.partialorder %v395_v44, 0.0 }
  0x2a   : > { %519 = vst [vmem:[#allocation2 + $0xa8] sm:$0xff] %v486_v41  ;;  %520 = vst [vmem:[#allocation2 + $0xb0] sm:$0xff] %v487_v42  ;;  %v488_v47 = vsel %vm424_vm10, %v392_v29, %v456_v39  ;;  %v489_v48 = vsel %vm425_vm11, %v393_v30, %v457_v40  ;;  %v459_v54 = vmul.f32 0.01, %v395_v44  ;;  %v396_v55 = vadd.f32 %v1650_v21, %v357_v49  ;;  %v326_v32 = vld [vmem:[%s1635_s19 + $0xb0] sm:$0xff]  ;;  %v328_v42 = vld [vmem:[%s1635_s19 + $0xc0] sm:$0xff] }
  0x2b   : > { %521 = vst [vmem:[#allocation2 + $0xc8] sm:$0xff] %v488_v47  ;;  %522 = vst [vmem:[#allocation2 + $0xd0] sm:$0xff] %v489_v48  ;;  %v397_v56 = vadd.f32 %v1650_v21, %v358_v50  ;;  %v359_v57 = vmul.f32 %v1645_v20, %v320_v45  ;;  %v360_v58 = vmul.f32 %v1645_v20, %v321_v46  ;;  %v330_v48 = vld [vmem:[%s1635_s19 + $0xd0] sm:$0xff]  ;;  %v331_v49 = vld [vmem:[%s1635_s19 + $0xd8] sm:$0xff] }
  0x2c   : > { %v490_v59 = vsel %vm426_vm12, %v394_v43, %v458_v53  ;;  %v491_v60 = vsel %vm427_vm13, %v395_v44, %v459_v54  ;;  %v361_v61 = vmul.f32 %v1645_v20, %v322_v51  ;;  %v362_v62 = vmul.f32 %v1645_v20, %v323_v52  ;;  %v329_v43 = vld [vmem:[%s1635_s19 + $0xc8] sm:$0xff] }
  0x2d   : > { %523 = vst [vmem:[#allocation2 + $0xe8] sm:$0xff] %v490_v59  ;;  %524 = vst [vmem:[#allocation2 + $0xf0] sm:$0xff] %v491_v60  ;;  %vm428_vm14 = vcmp.gt.f32.partialorder %v396_v55, 0.0  ;;  %v460_v22 = vmul.f32 0.01, %v396_v55  ;;  %vm429_vm15 = vcmp.gt.f32.partialorder %v397_v56, 0.0  ;;  %v398_v24 = vadd.f32 %v1650_v21, %v359_v57 }
  0x2e   : > { %v461_v23 = vmul.f32 0.01, %v397_v56  ;;  %v399_v25 = vadd.f32 %v1650_v21, %v360_v58  ;;  %v400_v26 = vadd.f32 %v1650_v21, %v361_v61  ;;  %v401_v27 = vadd.f32 %v1650_v21, %v362_v62  ;;  %v332_v60 = vld [vmem:[%s1635_s19 + $0xe0] sm:$0xff]  ;;  %v333_v61 = vld [vmem:[%s1635_s19 + $0xe8] sm:$0xff] }
  0x2f   : > { %v492_v28 = vsel %vm428_vm14, %v396_v55, %v460_v22  ;;  %v363_v30 = vmul.f32 %v1645_v20, %v324_v63  ;;  %v364_v31 = vmul.f32 %v1645_v20, %v325_v3  ;;  %vm430_vm0 = vcmp.gt.f32.partialorder %v398_v24, 0.0 }
  0x30   : > { %v493_v29 = vsel %vm429_vm15, %v397_v56, %v461_v23  ;;  %525 = vst [vmem:[#allocation2 + $0x108] sm:$0xff] %v492_v28  ;;  %v462_v34 = vmul.f32 0.01, %v398_v24  ;;  %vm431_vm1 = vcmp.gt.f32.partialorder %v399_v25, 0.0  ;;  %v463_v35 = vmul.f32 0.01, %v399_v25 }
  0x31   : > { %526 = vst [vmem:[#allocation2 + $0x110] sm:$0xff] %v493_v29  ;;  %vm432_vm2 = vcmp.gt.f32.partialorder %v400_v26, 0.0  ;;  %v464_v36 = vmul.f32 0.01, %v400_v26  ;;  %vm433_vm3 = vcmp.gt.f32.partialorder %v401_v27, 0.0  ;;  %v402_v40 = vadd.f32 %v1650_v21, %v363_v30  ;;  %v334_v29 = vld [vmem:[%s1635_s19 + $0xf0] sm:$0xff] }
  0x32   : > { %v465_v37 = vmul.f32 0.01, %v401_v27  ;;  %v494_v38 = vsel %vm430_vm0, %v398_v24, %v462_v34  ;;  %v495_v39 = vsel %vm431_vm1, %v399_v25, %v463_v35  ;;  %v403_v41 = vadd.f32 %v1650_v21, %v364_v31  ;;  %v335_v30 = vld [vmem:[%s1635_s19 + $0xf8] sm:$0xff] }
  0x33   : > { %527 = vst [vmem:[#allocation2 + $0x128] sm:$0xff] %v494_v38  ;;  %528 = vst [vmem:[#allocation2 + $0x130] sm:$0xff] %v495_v39  ;;  %v496_v44 = vsel %vm432_vm2, %v400_v26, %v464_v36  ;;  %v365_v46 = vmul.f32 %v1645_v20, %v326_v32  ;;  %v366_v47 = vmul.f32 %v1645_v20, %v327_v33  ;;  %vm434_vm4 = vcmp.gt.f32.partialorder %v402_v40, 0.0 }
  0x34   : > { %v497_v45 = vsel %vm433_vm3, %v401_v27, %v465_v37  ;;  %529 = vst [vmem:[#allocation2 + $0x148] sm:$0xff] %v496_v44  ;;  %v466_v50 = vmul.f32 0.01, %v402_v40  ;;  %vm435_vm5 = vcmp.gt.f32.partialorder %v403_v41, 0.0  ;;  %v467_v51 = vmul.f32 0.01, %v403_v41 }
  0x35   : > { %530 = vst [vmem:[#allocation2 + $0x150] sm:$0xff] %v497_v45  ;;  %v404_v52 = vadd.f32 %v1650_v21, %v365_v46  ;;  %v405_v53 = vadd.f32 %v1650_v21, %v366_v47  ;;  %v367_v54 = vmul.f32 %v1645_v20, %v328_v42  ;;  %v368_v55 = vmul.f32 %v1645_v20, %v329_v43 }
  0x36   : > { %v498_v56 = vsel %vm434_vm4, %v402_v40, %v466_v50  ;;  %v499_v57 = vsel %vm435_vm5, %v403_v41, %v467_v51  ;;  %v369_v58 = vmul.f32 %v1645_v20, %v330_v48  ;;  %v370_v59 = vmul.f32 %v1645_v20, %v331_v49 }
  0x37   : > { %531 = vst [vmem:[#allocation2 + $0x168] sm:$0xff] %v498_v56  ;;  %532 = vst [vmem:[#allocation2 + $0x170] sm:$0xff] %v499_v57  ;;  %vm436_vm6 = vcmp.gt.f32.partialorder %v404_v52, 0.0  ;;  %v468_v62 = vmul.f32 0.01, %v404_v52  ;;  %vm437_vm7 = vcmp.gt.f32.partialorder %v405_v53, 0.0  ;;  %v406_v3 = vadd.f32 %v1650_v21, %v367_v54 }
  0x38   : > { %v469_v63 = vmul.f32 0.01, %v405_v53  ;;  %v407_v22 = vadd.f32 %v1650_v21, %v368_v55  ;;  %v408_v23 = vadd.f32 %v1650_v21, %v369_v58  ;;  %v409_v24 = vadd.f32 %v1650_v21, %v370_v59 }
  0x39   : > { %v500_v25 = vsel %vm436_vm6, %v404_v52, %v468_v62  ;;  %v371_v27 = vmul.f32 %v1645_v20, %v332_v60  ;;  %v372_v28 = vmul.f32 %v1645_v20, %v333_v61  ;;  %vm438_vm8 = vcmp.gt.f32.partialorder %v406_v3, 0.0 }
  0x3a   : > { %v501_v26 = vsel %vm437_vm7, %v405_v53, %v469_v63  ;;  %533 = vst [vmem:[#allocation2 + $0x188] sm:$0xff] %v500_v25  ;;  %v470_v31 = vmul.f32 0.01, %v406_v3  ;;  %vm439_vm9 = vcmp.gt.f32.partialorder %v407_v22, 0.0  ;;  %v471_v32 = vmul.f32 0.01, %v407_v22 }
  0x3b   : > { %534 = vst [vmem:[#allocation2 + $0x190] sm:$0xff] %v501_v26  ;;  %vm440_vm10 = vcmp.gt.f32.partialorder %v408_v23, 0.0  ;;  %v472_v33 = vmul.f32 0.01, %v408_v23  ;;  %vm441_vm11 = vcmp.gt.f32.partialorder %v409_v24, 0.0  ;;  %v410_v37 = vadd.f32 %v1650_v21, %v371_v27 }
  0x3c   : > { %v473_v34 = vmul.f32 0.01, %v409_v24  ;;  %v502_v35 = vsel %vm438_vm8, %v406_v3, %v470_v31  ;;  %v503_v36 = vsel %vm439_vm9, %v407_v22, %v471_v32  ;;  %v411_v38 = vadd.f32 %v1650_v21, %v372_v28 }
  0x3d   : > { %535 = vst [vmem:[#allocation2 + $0x1a8] sm:$0xff] %v502_v35  ;;  %536 = vst [vmem:[#allocation2 + $0x1b0] sm:$0xff] %v503_v36  ;;  %v504_v39 = vsel %vm440_vm10, %v408_v23, %v472_v33  ;;  %v373_v41 = vmul.f32 %v1645_v20, %v334_v29  ;;  %v374_v42 = vmul.f32 %v1645_v20, %v335_v30  ;;  %vm442_vm12 = vcmp.gt.f32.partialorder %v410_v37, 0.0 }
  0x3e   : > { %v505_v40 = vsel %vm441_vm11, %v409_v24, %v473_v34  ;;  %537 = vst [vmem:[#allocation2 + $0x1c8] sm:$0xff] %v504_v39  ;;  %v474_v43 = vmul.f32 0.01, %v410_v37  ;;  %vm443_vm13 = vcmp.gt.f32.partialorder %v411_v38, 0.0  ;;  %v475_v44 = vmul.f32 0.01, %v411_v38 }
  0x3f   : > { %538 = vst [vmem:[#allocation2 + $0x1d0] sm:$0xff] %v505_v40  ;;  %v412_v45 = vadd.f32 %v1650_v21, %v373_v41  ;;  %v413_v46 = vadd.f32 %v1650_v21, %v374_v42  ;;  %v1753_v52 = vmov 0.0   ;;  %v1755_v53 = vmov 0.0  }
  0x40   : > { %v506_v47 = vsel %vm442_vm12, %v410_v37, %v474_v43  ;;  %v507_v48 = vsel %vm443_vm13, %v411_v38, %v475_v44 }
  0x41   : > { %539 = vst [vmem:[#allocation2 + $0x1e8] sm:$0xff] %v506_v47  ;;  %540 = vst [vmem:[#allocation2 + $0x1f0] sm:$0xff] %v507_v48  ;;  %vm444_vm14 = vcmp.gt.f32.partialorder %v412_v45, 0.0  ;;  %v476_v49 = vmul.f32 0.01, %v412_v45  ;;  %vm445_vm15 = vcmp.gt.f32.partialorder %v413_v46, 0.0 }
  0x42   : > { %v477_v50 = vmul.f32 0.01, %v413_v46 }
  0x43   : > { %v508_v51 = vsel %vm444_vm14, %v412_v45, %v476_v49 }
  0x44   : > { %v509_v20 = vsel %vm445_vm15, %v413_v46, %v477_v50  ;;  %541 = vst [vmem:[#allocation2 + $0x208] sm:$0xff] %v508_v51 }
  0x45   : > { %542 = vst [vmem:[#allocation2 + $0x210] sm:$0xff] %v509_v20 }
  0x46 LB: >> { %v2271_v4 = vld [vmem:[#allocation6_spill] sm:$0xff]  ;;  %v2272_v1 = vld [vmem:[#allocation4_spill] sm:$0xff]  ;;  %v2273_v0 = vld [vmem:[#allocation3_spill] sm:$0xff]  ;;  %s1286_s8 = sshll.u32 %s1487_s7, 8  ;;  %v593_v55 = vlaneseq  ;;  %v1388_v60 = vpack.c.bf16 %v1588_v11, %v1583_v10  ;;  %v1392_v25 = vpack.c.bf16 %v1600_v13, %v1593_v12  ;;  %v1795_v26 = vpack.c.bf16 %v1610_v15, %v1605_v14  ;;  %s1287_s10 = sshll.u32 %s1487_s7, 7  ;;  %s1487_s7 = sphi %s1757_s7, %s567_s7   ;;  %v1483_v53 = vphi %v1755_v53, %v2280_v53   ;;  %v1479_v52 = vphi %v1753_v52, %v2279_v52  }
  0x47   : >> { %v2274_v2 = vld [vmem:[#allocation5_spill] sm:$0xff]  ;;  %v2275_v5 = vld [vmem:[#allocation7_spill] sm:$0xff]  ;;  %v2276_v6 = vld [vmem:[#allocation8_spill] sm:$0xff]  ;;  %s1777_s9 = scalar_lea.vmem [#allocation2], %s1286_s8  ;;  %v1799_v27 = vpack.c.bf16 %v1620_v17, %v1615_v16  ;;  %v1807_v30 = vpack.c.bf16 %v1630_v19, %v1625_v18  ;;  %s2221_s11 = scalar_lea.vmem %s1640_s22, %s1287_s10 }
  0x48   : >> { %v1376_v21 = vpack.c.bf16 %v2275_v5, %v2274_v2  ;;  %v2277_v7 = vld [vmem:[#allocation9_spill] sm:$0xff]  ;;  %v2278_v8 = vld [vmem:[#allocation10_spill] sm:$0xff]  ;;  %v594_v57 = vshrl.u32 %v593_v55, 7  ;;  %s567_s7 = sadd.s32 1, %s1487_s7  }
  0x49   : >> { %v1380_v54 = vpack.c.bf16 %v2277_v7, %v2276_v6  ;;  %v1384_v56 = vpack.c.bf16 %v1578_v9, %v2278_v8  ;;  %p564_p4 = scmp.ge.s32.totalorder %s567_s7, 2  }
  0x4a   : >> { %1377 = vmatprep.subr.bf16.mxu0 %v1376_v21  ;;  %1408 = vmatprep.subr.bf16.mxu1 %v1376_v21  ;;  %v595_v58 = vsub.s32 0, %v594_v57  ;;  %v707_v59 = vsub.s32 1, %v594_v57  ;;  %v835_v63 = vsub.s32 2, %v594_v57 }
  0x4b   : >> { %1379 = vmatpush3.bf16.msra.mxu0 %v1376_v21  ;;  %1416 = vmatpush3.bf16.msra.mxu1 %v1376_v21 }
  0x4c   : >> { %1381 = vmatprep.subr.bf16.mxu0 %v1380_v54  ;;  %1409 = vmatprep.subr.bf16.mxu1 %v1380_v54  ;;  %v573_v61 = vld [vmem:[%s1777_s9 + $0x7] sm:$0xff]  ;;  %v1783_v22 = vrot.slane %v2273_v0, %v595_v58  ;;  %v1786_v23 = vrot.slane %v2272_v1, %v595_v58  ;;  %v1789_v24 = vrot.slane %v2271_v4, %v595_v58  ;;  %v574_v42 = vld [vmem:[%s1777_s9 + $0xf] sm:$0xff] }
  0x4d   : >> { %v575_v62 = vld [vmem:[%s1777_s9 + $0x27] sm:$0xff]  ;;  %v1803_v29 = vrot.slane %v2273_v0, %v707_v59  ;;  %v1812_v33 = vrot.slane %v2272_v1, %v707_v59  ;;  %v1817_v36 = vrot.slane %v2271_v4, %v707_v59  ;;  %v1820_v37 = vrot.slane %v2273_v0, %v835_v63  ;;  %v576_v43 = vld [vmem:[%s1777_s9 + $0x2f] sm:$0xff] }
  0x4e   : >> { %v577_v3 = vld [vmem:[%s1777_s9 + $0x47] sm:$0xff]  ;;  %v597_v31 = vmul.f32 %v1783_v22, %v573_v61  ;;  %v617_v32 = vmul.f32 %v1786_v23, %v575_v62  ;;  %v599_v38 = vmul.f32 %v1783_v22, %v575_v62  ;;  %v1843_v20 = vrot.slane %v2272_v1, %v835_v63  ;;  %v1846_v21 = vld [vmem:[%s1777_s9 + $0x4f] sm:$0xff] }
  0x4f   : >> { %1383 = vmatpush3.bf16.msra.mxu0 %v1380_v54  ;;  %1417 = vmatpush3.bf16.msra.mxu1 %v1380_v54  ;;  %v685_v28 = vld [vmem:[%s1777_s9 + $0x8] sm:$0xff]  ;;  %v653_v34 = vmul.f32 %v1789_v24, %v577_v3  ;;  %v1828_v44 = vmul.f32 %v1783_v22, %v577_v3  ;;  %v619_v45 = vmul.f32 %v1786_v23, %v577_v3  ;;  %v686_v54 = vld [vmem:[%s1777_s9 + $0x10] sm:$0xff] }
  0x50   : >> { %1385 = vmatprep.subr.bf16.mxu0 %v1384_v56  ;;  %1410 = vmatprep.subr.bf16.mxu1 %v1384_v56  ;;  %v687_v35 = vld [vmem:[%s1777_s9 + $0x28] sm:$0xff]  ;;  %v633_v39 = vadd.f32 %v617_v32, %v597_v31  ;;  %v709_v41 = vmul.f32 %v1803_v29, %v685_v28  ;;  %v598_v57 = vmul.f32 %v1783_v22, %v574_v42  ;;  %v1876_v42 = vld [vmem:[%s1777_s9 + $0x50] sm:$0xff] }
  0x51   : >> { %v689_v40 = vld [vmem:[%s1777_s9 + $0x48] sm:$0xff]  ;;  %v1832_v46 = vmul.f32 %v1803_v29, %v687_v35  ;;  %v745_v50 = vmul.f32 %v1812_v33, %v687_v35  ;;  %v618_v58 = vmul.f32 %v1786_v23, %v576_v43  ;;  %v654_v31 = vmul.f32 %v1789_v24, %v1846_v21 }
  0x52   : >> { %v1835_v47 = vmul.f32 %v1803_v29, %v689_v40  ;;  %v813_v48 = vld [vmem:[%s1777_s9 + $0x9] sm:$0xff]  ;;  %v669_v49 = vadd.f32 %v653_v34, %v633_v39  ;;  %v1840_v51 = vmul.f32 %v1812_v33, %v689_v40  ;;  %v781_v61 = vmul.f32 %v1817_v36, %v689_v40 }
  0x53   : >> { %1387 = vmatpush3.bf16.msra.mxu0 %v1384_v56  ;;  %1418 = vmatpush3.bf16.msra.mxu1 %v1384_v56  ;;  %v815_v55 = vld [vmem:[%s1777_s9 + $0x29] sm:$0xff]  ;;  %v1851_v56 = vrot.slane %v2271_v4, %v835_v63  ;;  %v837_v3 = vmul.f32 %v1820_v37, %v813_v48  ;;  %v634_v63 = vadd.f32 %v618_v58, %v598_v57  ;;  %v814_v48 = vld [vmem:[%s1777_s9 + $0x11] sm:$0xff] }
  0x54   : >> { %1389 = vmatprep.subr.bf16.mxu0 %v1388_v60  ;;  %1411 = vmatprep.subr.bf16.mxu1 %v1388_v60  ;;  %v725_v59 = vadd.f32 %v709_v41, %v669_v49  ;;  %v817_v62 = vld [vmem:[%s1777_s9 + $0x49] sm:$0xff]  ;;  %v1860_v28 = vmul.f32 %v1820_v37, %v815_v55  ;;  %v710_v32 = vmul.f32 %v1803_v29, %v686_v54  ;;  %v816_v58 = vld [vmem:[%s1777_s9 + $0x31] sm:$0xff] }
  0x55   : >> { %v1866_v34 = vld [vmem:[%s1777_s9 + $0x67] sm:$0xff]  ;;  %v1869_v39 = vmul.f32 %v1820_v37, %v817_v62  ;;  %v873_v40 = vmul.f32 %v1843_v20, %v815_v55  ;;  %v1873_v41 = vmul.f32 %v1843_v20, %v817_v62  ;;  %v909_v49 = vmul.f32 %v1851_v56, %v817_v62  ;;  %v1882_v57 = vld [vmem:[%s1777_s9 + $0x6f] sm:$0xff] }
  0x56   : >> { %v761_v35 = vadd.f32 %v745_v50, %v725_v59  ;;  %v670_v54 = vadd.f32 %v654_v31, %v634_v63  ;;  %v635_v59 = vadd.f32 %v619_v45, %v599_v38  ;;  %v655_v0 = vmul.f32 %v1789_v24, %v1866_v34  ;;  %v1890_v1 = vld [vmem:[%s1777_s9 + $0x68] sm:$0xff] }
  0x57   : >> { %1391 = vmatpush3.bf16.msra.mxu0 %v1388_v60  ;;  %1419 = vmatpush3.bf16.msra.mxu1 %v1388_v60  ;;  %v688_v60 = vld [vmem:[%s1777_s9 + $0x30] sm:$0xff]  ;;  %v782_v62 = vmul.f32 %v1817_v36, %v1876_v42  ;;  %v838_v63 = vmul.f32 %v1820_v37, %v814_v48  ;;  %v600_v31 = vmul.f32 %v1783_v22, %v576_v43  ;;  %v1918_v5 = vld [vmem:[%s1777_s9 + $0x87] sm:$0xff] }
  0x58   : >> { %1393 = vmatprep.subr.bf16.mxu0 %v1392_v25  ;;  %1412 = vmatprep.subr.bf16.mxu1 %v1392_v25  ;;  %v746_v50 = vmul.f32 %v1812_v33, %v688_v60  ;;  %v797_v55 = vadd.f32 %v781_v61, %v761_v35  ;;  %v1897_v61 = vld [vmem:[%s1777_s9 + $0x51] sm:$0xff]  ;;  %v671_v35 = vadd.f32 %v655_v0, %v635_v59  ;;  %v1900_v38 = vld [vmem:[%s1777_s9 + $0x69] sm:$0xff] }
  0x59   : >> { %v620_v45 = vmul.f32 %v1786_v23, %v1846_v21  ;;  %v874_v48 = vmul.f32 %v1843_v20, %v816_v58  ;;  %v783_v43 = vmul.f32 %v1817_v36, %v1890_v1  ;;  %v1914_v59 = vld [vmem:[%s1777_s9 + $0x70] sm:$0xff]  ;;  %v712_v4 = vmul.f32 %v1803_v29, %v688_v60 }
  0x5a   : >> { %v853_v2 = vadd.f32 %v837_v3, %v797_v55  ;;  %v727_v3 = vadd.f32 %v1832_v46, %v671_v35  ;;  %v911_v6 = vmul.f32 %v1851_v56, %v1900_v38  ;;  %v840_v35 = vmul.f32 %v1820_v37, %v816_v58 }
  0x5b   : >> { %1395 = vmatpush3.bf16.msra.mxu0 %v1392_v25  ;;  %1420 = vmatpush3.bf16.msra.mxu1 %v1392_v25  ;;  %v726_v25 = vadd.f32 %v710_v32, %v670_v54  ;;  %v656_v32 = vmul.f32 %v1789_v24, %v1882_v57  ;;  %v636_v55 = vadd.f32 %v620_v45, %v600_v31 }
  0x5c   : >> { %1397 = vmatprep.subr.bf16.mxu0 %v1795_v26  ;;  %1413 = vmatprep.subr.bf16.mxu1 %v1795_v26  ;;  %v889_v0 = vadd.f32 %v873_v40, %v853_v2  ;;  %v763_v46 = vadd.f32 %v1840_v51, %v727_v3  ;;  %v621_v40 = vmul.f32 %v1786_v23, %v1866_v34 }
  0x5d   : >> { %v762_v54 = vadd.f32 %v746_v50, %v726_v25  ;;  %v910_v25 = vmul.f32 %v1851_v56, %v1897_v61  ;;  %v672_v60 = vadd.f32 %v656_v32, %v636_v55  ;;  %v784_v31 = vmul.f32 %v1817_v36, %v1914_v59 }
  0x5e   : >> { %v925_v2 = vadd.f32 %v909_v49, %v889_v0  ;;  %v657_v45 = vmul.f32 %v1789_v24, %v1918_v5  ;;  %v799_v51 = vadd.f32 %v783_v43, %v763_v46  ;;  %v637_v32 = vadd.f32 %v621_v40, %v1828_v44  ;;  %v1953_v43 = vld [vmem:[%s1777_s9 + $0x71] sm:$0xff] }
  0x5f   : >> { %1399 = vmatpush3.bf16.msra.mxu0 %v1795_v26  ;;  %1421 = vmatpush3.bf16.msra.mxu1 %v1795_v26  ;;  %v798_v50 = vadd.f32 %v782_v62, %v762_v54  ;;  %v748_v26 = vmul.f32 %v1812_v33, %v1876_v42  ;;  %v728_v49 = vadd.f32 %v712_v4, %v672_v60  ;;  %v1939_v54 = vld [vmem:[%s1777_s9 + $0x88] sm:$0xff] }
  0x60   : >> { %1401 = vmatprep.subr.bf16.mxu0 %v1799_v27  ;;  %1414 = vmatprep.subr.bf16.mxu1 %v1799_v27  ;;  %v876_v58 = vmul.f32 %v1843_v20, %v1897_v61  ;;  %v749_v3 = vmul.f32 %v1812_v33, %v1890_v1  ;;  %v602_v55 = vmul.f32 %v1783_v22, %v1846_v21 }
  0x61   : >> { %v854_v62 = vadd.f32 %v838_v63, %v798_v50  ;;  %1352 = vmatprep.mubr.f32.mxu0 %v925_v2  ;;  %v1942_v63 = vld [vmem:[%s1777_s9 + $0x8f] sm:$0xff]  ;;  %v855_v4 = vadd.f32 %v1860_v28, %v799_v51  ;;  %v764_v44 = vadd.f32 %v748_v26, %v728_v49  ;;  %v673_v50 = vadd.f32 %v657_v45, %v637_v32  ;;  %v1974_v51 = vld [vmem:[%s1777_s9 + $0xa7] sm:$0xff] }
  0x62   : >> { %v622_v2 = vmul.f32 %v1786_v23, %v1882_v57  ;;  %v785_v21 = vmul.f32 %v1817_v36, %v1939_v54  ;;  %v658_v28 = vmul.f32 %v1789_v24, %v1942_v63  ;;  %v714_v26 = vmul.f32 %v1803_v29, %v1876_v42  ;;  %v1971_v45 = vld [vmem:[%s1777_s9 + $0x90] sm:$0xff] }
  0x63   : >> { %1403 = vmatpush3.bf16.msra.mxu0 %v1799_v27  ;;  %v890_v0 = vadd.f32 %v874_v48, %v854_v62  ;;  %1422 = vmatpush3.bf16.msra.mxu1 %v1799_v27  ;;  %v1956_v48 = vld [vmem:[%s1777_s9 + $0x89] sm:$0xff]  ;;  %v891_v46 = vadd.f32 %v1873_v41, %v855_v4  ;;  %v800_v60 = vadd.f32 %v784_v31, %v764_v44 }
  0x64   : >> { %1405 = vmatprep.subr.bf16.mxu0 %v1807_v30  ;;  %1415 = vmatprep.subr.bf16.mxu1 %v1807_v30  ;;  %v729_v40 = vadd.f32 %v1835_v47, %v673_v50  ;;  %v638_v62 = vadd.f32 %v622_v2, %v602_v55  ;;  %v877_v49 = vmul.f32 %v1843_v20, %v1900_v38  ;;  %v1986_v55 = vld [vmem:[%s1777_s9 + $0x91] sm:$0xff] }
  0x65   : >> { %v926_v27 = vadd.f32 %v910_v25, %v890_v0  ;;  %v912_v25 = vmul.f32 %v1851_v56, %v1953_v43  ;;  %v913_v42 = vmul.f32 %v1851_v56, %v1956_v48  ;;  %v750_v41 = vmul.f32 %v1812_v33, %v1914_v59 }
  0x66   : >> { %v927_v47 = vadd.f32 %v911_v6, %v891_v46  ;;  %v856_v31 = vadd.f32 %v840_v35, %v800_v60  ;;  %v765_v32 = vadd.f32 %v749_v3, %v729_v40  ;;  %v674_v0 = vadd.f32 %v658_v28, %v638_v62  ;;  %v2006_v60 = vld [vmem:[%s1777_s9 + $0xa8] sm:$0xff] }
  0x67   : >> { %1407 = vmatpush3.bf16.msra.mxu0 %v1807_v30  ;;  %1423 = vmatpush3.bf16.msra.mxu1 %v1807_v30  ;;  %v786_v4 = vmul.f32 %v1817_v36, %v1971_v45  ;;  %v603_v44 = vmul.f32 %v1783_v22, %v1866_v34  ;;  %v623_v50 = vmul.f32 %v1786_v23, %v1918_v5 }
  0x68   : >> { %v659_v30 = vmul.f32 %v1789_v24, %v1974_v51  ;;  %v892_v6 = vadd.f32 %v876_v58, %v856_v31  ;;  %v801_v35 = vadd.f32 %v785_v21, %v765_v32  ;;  %v730_v3 = vadd.f32 %v714_v26, %v674_v0 }
  0x69   : >> { %v842_v2 = vmul.f32 %v1820_v37, %v1897_v61  ;;  %v878_v28 = vmul.f32 %v1843_v20, %v1953_v43  ;;  %v914_v34 = vmul.f32 %v1851_v56, %v1986_v55  ;;  %v639_v46 = vadd.f32 %v623_v50, %v603_v44  ;;  %v2027_v44 = vld [vmem:[%s1777_s9 + $0xb0] sm:$0xff] }
  0x6a   : >> { %1353 = vmatmul.mubr.f32.vlgmr.msra.gmra.mrb[0].mxu0 %v926_v27  ;;  %v1999_v27 = vld [vmem:[%s1777_s9 + $0xaf] sm:$0xff]  ;;  %v715_v58 = vmul.f32 %v1803_v29, %v1890_v1  ;;  %v928_v21 = vadd.f32 %v912_v25, %v892_v6  ;;  %v857_v26 = vadd.f32 %v1869_v39, %v801_v35  ;;  %v766_v40 = vadd.f32 %v750_v41, %v730_v3  ;;  %v585_v35 = vld [vmem:[%s1777_s9 + $0xc7] sm:$0xff] }
  0x6b   : >> { %1355 = vmatprep.mubr.f32.mxu0 %v927_v47  ;;  %v751_v61 = vmul.f32 %v1812_v33, %v1939_v54  ;;  %v675_v62 = vadd.f32 %v659_v30, %v639_v46  ;;  %v2014_v47 = vld [vmem:[%s1777_s9 + $0xa9] sm:$0xff]  ;;  %v604_v31 = vmul.f32 %v1783_v22, %v1882_v57  ;;  %v624_v32 = vmul.f32 %v1786_v23, %v1942_v63  ;;  %v2039_v46 = vld [vmem:[%s1777_s9 + $0xb1] sm:$0xff] }
  0x6c   : >> { %v660_v1 = vmul.f32 %v1789_v24, %v1999_v27  ;;  %v893_v39 = vadd.f32 %v877_v49, %v857_v26  ;;  %v802_v25 = vadd.f32 %v786_v4, %v766_v40  ;;  %v787_v41 = vmul.f32 %v1817_v36, %v2006_v60 }
  0x6d   : >> { %v843_v0 = vmul.f32 %v1820_v37, %v1900_v38  ;;  %v731_v50 = vadd.f32 %v715_v58, %v675_v62  ;;  %v879_v57 = vmul.f32 %v1843_v20, %v1956_v48  ;;  %v640_v30 = vadd.f32 %v624_v32, %v604_v31 }
  0x6e   : >> { %1356 = vmatmul.mubr.f32.gmra.mrb[2].mxu0 %v928_v21  ;;  %v716_v6 = vmul.f32 %v1803_v29, %v1914_v59  ;;  %v929_v3 = vadd.f32 %v913_v42, %v893_v39  ;;  %v858_v49 = vadd.f32 %v842_v2, %v802_v25  ;;  %v915_v4 = vmul.f32 %v1851_v56, %v2014_v47 }
  0x6f   : >> { %v752_v38 = vmul.f32 %v1812_v33, %v1971_v45  ;;  %v767_v58 = vadd.f32 %v751_v61, %v731_v50  ;;  %v676_v21 = vadd.f32 %v660_v1, %v640_v30  ;;  %v788_v26 = vmul.f32 %v1817_v36, %v2027_v44 }
  0x70   : >> { %v605_v59 = vmul.f32 %v1783_v22, %v1918_v5  ;;  %1358 = vmatprep.mubr.f32.mxu0 %v929_v3  ;;  %v894_v42 = vadd.f32 %v878_v28, %v858_v49  ;;  %v844_v2 = vmul.f32 %v1820_v37, %v1953_v43  ;;  %v625_v40 = vmul.f32 %v1786_v23, %v1974_v51  ;;  %v697_v5 = vld [vmem:[%s1777_s9 + $0xc8] sm:$0xff] }
  0x71   : >> { %v661_v62 = vmul.f32 %v1789_v24, %v585_v35  ;;  %v803_v31 = vadd.f32 %v787_v41, %v767_v58  ;;  %v732_v61 = vadd.f32 %v716_v6, %v676_v21  ;;  %v880_v32 = vmul.f32 %v1843_v20, %v1986_v55  ;;  %v2065_v3 = vld [vmem:[%s1777_s9 + $0xcf] sm:$0xff] }
  0x72   : >> { %v916_v1 = vmul.f32 %v1851_v56, %v2039_v46  ;;  %v930_v39 = vadd.f32 %v914_v34, %v894_v42  ;;  %v2056_v28 = vmul.f32 %v1783_v22, %v585_v35  ;;  %v641_v43 = vadd.f32 %v625_v40, %v605_v59  ;;  %v825_v21 = vld [vmem:[%s1777_s9 + $0xc9] sm:$0xff] }
  0x73   : >> { %v717_v25 = vmul.f32 %v1803_v29, %v1939_v54  ;;  %v859_v50 = vadd.f32 %v843_v0, %v803_v31  ;;  %v768_v30 = vadd.f32 %v752_v38, %v732_v61  ;;  %v627_v41 = vmul.f32 %v1786_v23, %v585_v35  ;;  %v2084_v61 = vld [vmem:[%s1777_s9 + $0xe7] sm:$0xff] }
  0x74   : >> { %v2062_v6 = vmul.f32 %v1803_v29, %v697_v5  ;;  %1359 = vmatmul.mubr.f32.gmra.mrb[4].mxu0 %v930_v39  ;;  %v677_v34 = vadd.f32 %v661_v62, %v641_v43  ;;  %v753_v49 = vmul.f32 %v1812_v33, %v2006_v60  ;;  %v755_v58 = vmul.f32 %v1812_v33, %v697_v5 }
  0x75   : >> { %v789_v54 = vmul.f32 %v1817_v36, %v697_v5  ;;  %v895_v0 = vadd.f32 %v879_v57, %v859_v50  ;;  %v804_v38 = vadd.f32 %v788_v26, %v768_v30  ;;  %v845_v35 = vmul.f32 %v1820_v37, %v1956_v48  ;;  %v2092_v5 = vld [vmem:[%s1777_s9 + $0xd0] sm:$0xff] }
  0x76   : >> { %v606_v59 = vmul.f32 %v1783_v22, %v1942_v63  ;;  %v733_v42 = vadd.f32 %v717_v25, %v677_v34  ;;  %v2077_v40 = vmul.f32 %v1820_v37, %v825_v21  ;;  %v626_v62 = vmul.f32 %v1786_v23, %v1999_v27 }
  0x77   : >> { %v662_v31 = vmul.f32 %v1789_v24, %v2065_v3  ;;  %v931_v57 = vadd.f32 %v915_v4, %v895_v0  ;;  %v860_v26 = vadd.f32 %v844_v2, %v804_v38  ;;  %v881_v48 = vmul.f32 %v1843_v20, %v2014_v47 }
  0x78   : >> { %v2089_v63 = vmul.f32 %v1843_v20, %v825_v21  ;;  %v769_v39 = vadd.f32 %v753_v49, %v733_v42  ;;  %v917_v43 = vmul.f32 %v1851_v56, %v825_v21  ;;  %v642_v25 = vadd.f32 %v626_v62, %v606_v59  ;;  %v2106_v21 = vld [vmem:[%s1777_s9 + $0xd1] sm:$0xff] }
  0x79   : >> { %v718_v50 = vmul.f32 %v1803_v29, %v1971_v45  ;;  %1361 = vmatprep.mubr.f32.mxu0 %v931_v57  ;;  %v896_v4 = vadd.f32 %v880_v32, %v860_v26  ;;  %v754_v2 = vmul.f32 %v1812_v33, %v2027_v44  ;;  %v607_v30 = vmul.f32 %v1783_v22, %v1974_v51  ;;  %v2111_v32 = vld [vmem:[%s1777_s9 + $0xe8] sm:$0xff] }
  0x7a   : >> { %v663_v34 = vmul.f32 %v1789_v24, %v2084_v61  ;;  %v805_v0 = vadd.f32 %v789_v54, %v769_v39  ;;  %v678_v49 = vadd.f32 %v662_v31, %v642_v25  ;;  %v790_v38 = vmul.f32 %v1817_v36, %v2092_v5  ;;  %v2114_v59 = vld [vmem:[%s1777_s9 + $0xef] sm:$0xff] }
  0x7b   : >> { %v846_v45 = vmul.f32 %v1820_v37, %v1986_v55  ;;  %v932_v42 = vadd.f32 %v916_v1, %v896_v4  ;;  %v882_v51 = vmul.f32 %v1843_v20, %v2039_v46  ;;  %v643_v62 = vadd.f32 %v627_v41, %v607_v30  ;;  %v2121_v26 = vld [vmem:[%s1777_s9 + $0xe9] sm:$0xff] }
  0x7c   : >> { %v719_v54 = vmul.f32 %v1803_v29, %v2006_v60  ;;  %v861_v31 = vadd.f32 %v845_v35, %v805_v0  ;;  %v734_v57 = vadd.f32 %v718_v50, %v678_v49  ;;  %v608_v55 = vmul.f32 %v1783_v22, %v1999_v27  ;;  %v2134_v30 = vld [vmem:[%s1777_s9 + $0xf0] sm:$0xff]  ;;  %v589_v0 = vld [vmem:[%s1777_s9 + $0x107] sm:$0xff] }
  0x7d   : >> { %v628_v39 = vmul.f32 %v1786_v23, %v2065_v3  ;;  %1362 = vmatmul.mubr.f32.gmra.mrb[6].mxu0 %v932_v42  ;;  %v918_v1 = vmul.f32 %v1851_v56, %v2106_v21  ;;  %v679_v25 = vadd.f32 %v663_v34, %v643_v62  ;;  %v791_v41 = vmul.f32 %v1817_v36, %v2111_v32 }
  0x7e   : >> { %v664_v60 = vmul.f32 %v1789_v24, %v2114_v59  ;;  %v897_v35 = vadd.f32 %v881_v48, %v861_v31  ;;  %v770_v50 = vadd.f32 %v754_v2, %v734_v57  ;;  %v720_v27 = vmul.f32 %v1803_v29, %v2027_v44 }
  0x7f   : >> { %v644_v4 = vadd.f32 %v628_v39, %v608_v55  ;;  %v735_v49 = vadd.f32 %v719_v54, %v679_v25  ;;  %v847_v34 = vmul.f32 %v1820_v37, %v2014_v47  ;;  %v919_v42 = vmul.f32 %v1851_v56, %v2121_v26  ;;  %v590_v39 = vld [vmem:[%s1777_s9 + $0x10f] sm:$0xff] }
  0x80   : >> { %v756_v48 = vmul.f32 %v1812_v33, %v2092_v5  ;;  %v933_v2 = vadd.f32 %v917_v43, %v897_v35  ;;  %v806_v62 = vadd.f32 %v790_v38, %v770_v50  ;;  %v629_v57 = vmul.f32 %v1786_v23, %v2084_v61  ;;  %v2154_v43 = vld [vmem:[%s1777_s9 + $0xf1] sm:$0xff]  ;;  %v701_v35 = vld [vmem:[%s1777_s9 + $0x108] sm:$0xff] }
  0x81   : >> { %v680_v31 = vadd.f32 %v664_v60, %v644_v4  ;;  %v771_v44 = vadd.f32 %v755_v58, %v735_v49  ;;  %v792_v54 = vmul.f32 %v1817_v36, %v2134_v30  ;;  %v848_v47 = vmul.f32 %v1820_v37, %v2039_v46 }
  0x82   : >> { %v665_v55 = vmul.f32 %v1789_v24, %v589_v0  ;;  %1364 = vmatprep.mubr.f32.mxu1 %v933_v2  ;;  %v862_v25 = vadd.f32 %v846_v45, %v806_v62  ;;  %v884_v38 = vmul.f32 %v1843_v20, %v2106_v21  ;;  %v645_v58 = vadd.f32 %v629_v57, %v2056_v28 }
  0x83   : >> { %v736_v7 = vadd.f32 %v720_v27, %v680_v31  ;;  %v807_v60 = vadd.f32 %v791_v41, %v771_v44  ;;  %v757_v50 = vmul.f32 %v1812_v33, %v2111_v32  ;;  %v610_v46 = vmul.f32 %v1783_v22, %v2065_v3  ;;  %v702_v31 = vld [vmem:[%s1777_s9 + $0x110] sm:$0xff] }
  0x84   : >> { %v630_v45 = vmul.f32 %v1786_v23, %v2114_v59  ;;  %v898_v4 = vadd.f32 %v882_v51, %v862_v25  ;;  %v681_v49 = vadd.f32 %v665_v55, %v645_v58  ;;  %v666_v2 = vmul.f32 %v1789_v24, %v590_v39  ;;  %v829_v55 = vld [vmem:[%s1777_s9 + $0x109] sm:$0xff] }
  0x85   : >> { %v772_v27 = vadd.f32 %v756_v48, %v736_v7  ;;  %v863_v62 = vadd.f32 %v847_v34, %v807_v60  ;;  %v920_v28 = vmul.f32 %v1851_v56, %v2154_v43  ;;  %v722_v57 = vmul.f32 %v1803_v29, %v2092_v5  ;;  %v591_v7 = vld [vmem:[%s1777_s9 + $0x127] sm:$0xff] }
  0x86   : >> { %v646_v41 = vadd.f32 %v630_v45, %v610_v46  ;;  %v934_v44 = vadd.f32 %v918_v1, %v898_v4  ;;  %v737_v8 = vadd.f32 %v2062_v6, %v681_v49  ;;  %v793_v51 = vmul.f32 %v1817_v36, %v701_v35  ;;  %v830_v46 = vld [vmem:[%s1777_s9 + $0x111] sm:$0xff] }
  0x87   : >> { %v808_v3 = vadd.f32 %v792_v54, %v772_v27  ;;  %v899_v48 = vadd.f32 %v2089_v63, %v863_v62  ;;  %v885_v34 = vmul.f32 %v1843_v20, %v2121_v26  ;;  %v758_v58 = vmul.f32 %v1812_v33, %v2134_v30  ;;  %v592_v62 = vld [vmem:[%s1777_s9 + $0x12f] sm:$0xff] }
  0x88   : >> { %v682_v25 = vadd.f32 %v666_v2, %v646_v41  ;;  %1365 = vmatmul.mubr.f32.vlgmr.msra.gmra.mrb[0].mxu1 %v934_v44  ;;  %v773_v1 = vadd.f32 %v757_v50, %v737_v8  ;;  %v794_v54 = vmul.f32 %v1817_v36, %v702_v31  ;;  %v611_v6 = vmul.f32 %v1783_v22, %v2084_v61  ;;  %v703_v2 = vld [vmem:[%s1777_s9 + $0x128] sm:$0xff] }
  0x89   : >> { %v864_v5 = vadd.f32 %v848_v47, %v808_v3  ;;  %v935_v60 = vadd.f32 %v919_v42, %v899_v48  ;;  %v631_v45 = vmul.f32 %v1786_v23, %v589_v0  ;;  %v667_v4 = vmul.f32 %v1789_v24, %v591_v7 }
  0x8a   : >> { %v738_v63 = vadd.f32 %v722_v57, %v682_v25  ;;  %v809_v49 = vadd.f32 %v793_v51, %v773_v1  ;;  %v921_v47 = vmul.f32 %v1851_v56, %v829_v55  ;;  %v850_v8 = vmul.f32 %v1820_v37, %v2106_v21  ;;  %v704_v21 = vld [vmem:[%s1777_s9 + $0x130] sm:$0xff] }
  0x8b   : >> { %v900_v27 = vadd.f32 %v884_v38, %v864_v5  ;;  %1367 = vmatprep.mubr.f32.mxu1 %v935_v60  ;;  %v886_v61 = vmul.f32 %v1843_v20, %v2154_v43  ;;  %v647_v42 = vadd.f32 %v631_v45, %v611_v6  ;;  %v723_v0 = vmul.f32 %v1803_v29, %v2111_v32  ;;  %v832_v25 = vld [vmem:[%s1777_s9 + $0x131] sm:$0xff] }
  0x8c   : >> { %v774_v50 = vadd.f32 %v758_v58, %v738_v63  ;;  %v865_v38 = vadd.f32 %v2077_v40, %v809_v49  ;;  %v922_v57 = vmul.f32 %v1851_v56, %v830_v46  ;;  %v759_v44 = vmul.f32 %v1812_v33, %v701_v35 }
  0x8d   : >> { %v936_v41 = vadd.f32 %v920_v28, %v900_v27  ;;  %v683_v51 = vadd.f32 %v667_v4, %v647_v42  ;;  %v612_v7 = vmul.f32 %v1783_v22, %v2114_v59  ;;  %v632_v48 = vmul.f32 %v1786_v23, %v590_v39 }
  0x8e   : >> { %v810_v3 = vadd.f32 %v794_v54, %v774_v50  ;;  %v901_v58 = vadd.f32 %v885_v34, %v865_v38  ;;  %v795_v32 = vmul.f32 %v1817_v36, %v703_v2  ;;  %v668_v40 = vmul.f32 %v1789_v24, %v592_v62 }
  0x8f   : >> { %1368 = vmatmul.mubr.f32.gmra.mrb[2].mxu1 %v936_v41  ;;  %v724_v28 = vmul.f32 %v1803_v29, %v2134_v30  ;;  %v739_v5 = vadd.f32 %v723_v0, %v683_v51  ;;  %v648_v1 = vadd.f32 %v632_v48, %v612_v7  ;;  %v796_v54 = vmul.f32 %v1817_v36, %v704_v21  ;;  %v831_v29 = vld [vmem:[%s1777_s9 + $0x129] sm:$0xff] }
  0x90   : >> { %v866_v35 = vadd.f32 %v850_v8, %v810_v3  ;;  %v937_v6 = vadd.f32 %v921_v47, %v901_v58  ;;  %v851_v22 = vmul.f32 %v1820_v37, %v2121_v26  ;;  %v888_v23 = vmul.f32 %v1843_v20, %v830_v46 }
  0x91   : >> { %v924_v59 = vmul.f32 %v1851_v56, %v832_v25  ;;  %v775_v34 = vadd.f32 %v759_v44, %v739_v5  ;;  %v684_v60 = vadd.f32 %v668_v40, %v648_v1  ;;  %v760_v24 = vmul.f32 %v1812_v33, %v702_v31 }
  0x92   : >> { %v902_v39 = vadd.f32 %v886_v61, %v866_v35  ;;  %1370 = vmatprep.mubr.f32.mxu1 %v937_v6  ;;  %v887_v36 = vmul.f32 %v1843_v20, %v829_v55  ;;  %v923_v46 = vmul.f32 %v1851_v56, %v831_v29  ;;  %v852_v27 = vmul.f32 %v1820_v37, %v2154_v43 }
  0x93   : >> { %v811_v63 = vadd.f32 %v795_v32, %v775_v34  ;;  %v740_v45 = vadd.f32 %v724_v28, %v684_v60 }
  0x94   : >> { %v938_v30 = vadd.f32 %v922_v57, %v902_v39 }
  0x95   : >> { %v867_v26 = vadd.f32 %v851_v22, %v811_v63  ;;  %v776_v4 = vadd.f32 %v760_v24, %v740_v45 }
  0x96   : >> { %1371 = vmatmul.mubr.f32.gmra.mrb[4].mxu1 %v938_v30 }
  0x97   : >> { %v903_v49 = vadd.f32 %v887_v36, %v867_v26  ;;  %v812_v47 = vadd.f32 %v796_v54, %v776_v4 }
  0x99   : >> { %v939_v33 = vadd.f32 %v923_v46, %v903_v49  ;;  %v868_v31 = vadd.f32 %v852_v27, %v812_v47 }
  0x9b   : >> { %1373 = vmatprep.mubr.f32.mxu1 %v939_v33  ;;  %v904_v8 = vadd.f32 %v888_v23, %v868_v31 }
  0x9d   : >> { %v940_v50 = vadd.f32 %v924_v59, %v904_v8 }
  0x9f   : >> { %1374 = vmatmul.mubr.f32.gmra.mrb[6].mxu1 %v940_v50 }
 0x13d   : >> { %v1354_v20 = vpop.f32.mrb[0].mxu0 }
 0x13e   : >> { %1089 = vst [vmem:[%s2221_s11 + $0x8] sm:$0xff] %v1354_v20  ;;  %v1127_v56 = vmul.f32 %v1354_v20, %v1354_v20  ;;  %v1007_v55 = vpop.f32.mrb[1].mxu0 }
 0x13f   : >> { %1088 = vst [vmem:[%s2221_s11] sm:$0xff] %v1007_v55  ;;  %v1104_v37 = vadd.f32 %v1354_v20, %v1007_v55  ;;  %v1126_v43 = vmul.f32 %v1007_v55, %v1007_v55 }
 0x141   : >> { %v1142_v61 = vadd.f32 %v1127_v56, %v1126_v43  ;;  %v1357_v42 = vpop.f32.mrb[2].mxu0 }
 0x142   : >> { %1091 = vst [vmem:[%s2221_s11 + $0x18] sm:$0xff] %v1357_v42  ;;  %v1017_v2 = vpop.f32.mrb[3].mxu0  ;;  %v1129_v41 = vmul.f32 %v1357_v42, %v1357_v42 }
 0x143   : >> { %1090 = vst [vmem:[%s2221_s11 + $0x10] sm:$0xff] %v1017_v2  ;;  %v1105_v0 = vadd.f32 %v1104_v37, %v1017_v2  ;;  %v1128_v62 = vmul.f32 %v1017_v2, %v1017_v2 }
 0x145   : >> { %v1143_v38 = vadd.f32 %v1142_v61, %v1128_v62  ;;  %v1106_v57 = vadd.f32 %v1357_v42, %v1105_v0 }
 0x147   : >> { %v1144_v44 = vadd.f32 %v1143_v38, %v1129_v41  ;;  %v1360_v21 = vpop.f32.mrb[4].mxu0 }
 0x148   : >> { %1093 = vst [vmem:[%s2221_s11 + $0x28] sm:$0xff] %v1360_v21  ;;  %v1027_v3 = vpop.f32.mrb[5].mxu0  ;;  %v1131_v48 = vmul.f32 %v1360_v21, %v1360_v21 }
 0x149   : >> { %1092 = vst [vmem:[%s2221_s11 + $0x20] sm:$0xff] %v1027_v3  ;;  %v1107_v51 = vadd.f32 %v1106_v57, %v1027_v3  ;;  %v1130_v7 = vmul.f32 %v1027_v3, %v1027_v3 }
 0x14b   : >> { %v1145_v25 = vadd.f32 %v1144_v44, %v1130_v7  ;;  %v1108_v58 = vadd.f32 %v1360_v21, %v1107_v51 }
 0x14d   : >> { %v1146_v32 = vadd.f32 %v1145_v25, %v1131_v48 }
 0x150   : >> { %v1363_v40 = vpop.f32.mrb[6].mxu0 }
 0x151   : >> { %1095 = vst [vmem:[%s2221_s11 + $0x38] sm:$0xff] %v1363_v40  ;;  %v1037_v28 = vpop.f32.mrb[7].mxu0  ;;  %v1133_v1 = vmul.f32 %v1363_v40, %v1363_v40 }
 0x152   : >> { %1094 = vst [vmem:[%s2221_s11 + $0x30] sm:$0xff] %v1037_v28  ;;  %v1109_v35 = vadd.f32 %v1108_v58, %v1037_v28  ;;  %v1132_v5 = vmul.f32 %v1037_v28, %v1037_v28 }
 0x154   : >> { %v1110_v54 = vadd.f32 %v1363_v40, %v1109_v35  ;;  %v1147_v6 = vadd.f32 %v1146_v32, %v1132_v5 }
 0x156   : >> { %v1148_v22 = vadd.f32 %v1147_v6, %v1133_v1 }
 0x15b   : >> { %v1366_v23 = vpop.f32.mrb[0].mxu1 }
 0x15c   : >> { %1097 = vst [vmem:[%s2221_s11 + $0x48] sm:$0xff] %v1366_v23  ;;  %v1047_v59 = vpop.f32.mrb[1].mxu1  ;;  %v1135_v60 = vmul.f32 %v1366_v23, %v1366_v23 }
 0x15d   : >> { %1096 = vst [vmem:[%s2221_s11 + $0x40] sm:$0xff] %v1047_v59  ;;  %v1111_v39 = vadd.f32 %v1110_v54, %v1047_v59  ;;  %v1134_v34 = vmul.f32 %v1047_v59, %v1047_v59 }
 0x15f   : >> { %v1149_v24 = vadd.f32 %v1148_v22, %v1134_v34  ;;  %v1112_v29 = vadd.f32 %v1366_v23, %v1111_v39 }
 0x161   : >> { %v1150_v63 = vadd.f32 %v1149_v24, %v1135_v60 }
 0x162   : >> { %v1369_v30 = vpop.f32.mrb[2].mxu1 }
 0x163   : >> { %1099 = vst [vmem:[%s2221_s11 + $0x58] sm:$0xff] %v1369_v30  ;;  %v1057_v36 = vpop.f32.mrb[3].mxu1  ;;  %v1137_v46 = vmul.f32 %v1369_v30, %v1369_v30 }
 0x164   : >> { %1098 = vst [vmem:[%s2221_s11 + $0x50] sm:$0xff] %v1057_v36  ;;  %v1113_v45 = vadd.f32 %v1112_v29, %v1057_v36  ;;  %v1136_v26 = vmul.f32 %v1057_v36, %v1057_v36 }
 0x166   : >> { %v1151_v4 = vadd.f32 %v1150_v63, %v1136_v26  ;;  %v1114_v27 = vadd.f32 %v1369_v30, %v1113_v45 }
 0x168   : >> { %v1152_v49 = vadd.f32 %v1151_v4, %v1137_v46 }
 0x169   : >> { %v1372_v47 = vpop.f32.mrb[4].mxu1 }
 0x16a   : >> { %1101 = vst [vmem:[%s2221_s11 + $0x68] sm:$0xff] %v1372_v47  ;;  %v1067_v33 = vpop.f32.mrb[5].mxu1  ;;  %v1139_v50 = vmul.f32 %v1372_v47, %v1372_v47 }
 0x16b   : >> { %1100 = vst [vmem:[%s2221_s11 + $0x60] sm:$0xff] %v1067_v33  ;;  %v1115_v31 = vadd.f32 %v1114_v27, %v1067_v33  ;;  %v1138_v8 = vmul.f32 %v1067_v33, %v1067_v33 }
 0x16d   : >> { %v1153_v20 = vadd.f32 %v1152_v49, %v1138_v8  ;;  %v1116_v56 = vadd.f32 %v1372_v47, %v1115_v31 }
 0x16f   : >> { %v1154_v55 = vadd.f32 %v1153_v20, %v1139_v50 }
 0x172   : >> { %v1375_v37 = vpop.f32.mrb[6].mxu1 }
 0x173   : >> { %1103 = vst [vmem:[%s2221_s11 + $0x78] sm:$0xff] %v1375_v37  ;;  %v1077_v43 = vpop.f32.mrb[7].mxu1  ;;  %v1141_v2 = vmul.f32 %v1375_v37, %v1375_v37 }
 0x174   : >> { %1102 = vst [vmem:[%s2221_s11 + $0x70] sm:$0xff] %v1077_v43  ;;  %v1117_v61 = vadd.f32 %v1116_v56, %v1077_v43  ;;  %v1140_v42 = vmul.f32 %v1077_v43, %v1077_v43 }
 0x176   : >> { %v1118_v0 = vadd.f32 %v1375_v37, %v1117_v61  ;;  %v1155_v62 = vadd.f32 %v1154_v55, %v1140_v42 }
 0x178   : >> { %v1119_v41 = vrot.slane %v1118_v0, 4  ;;  %v1156_v38 = vadd.f32 %v1155_v62, %v1141_v2 }
 0x17a   : >> { %v1120_v57 = vadd.f32 %v1119_v41, %v1118_v0  ;;  %v1157_v44 = vrot.slane %v1156_v38, 4 }
 0x17c   : >> { %v1121_v21 = vrot.slane %v1120_v57, 2  ;;  %v1158_v3 = vadd.f32 %v1157_v44, %v1156_v38 }
 0x17e   : >> { %v1122_v51 = vadd.f32 %v1121_v21, %v1120_v57  ;;  %v1159_v7 = vrot.slane %v1158_v3, 2 }
 0x180   : >> { %v1123_v48 = vrot.slane %v1122_v51, 1  ;;  %v1160_v25 = vadd.f32 %v1159_v7, %v1158_v3 }
 0x182   : >> { %v1124_v58 = vadd.f32 %v1123_v48, %v1122_v51  ;;  %v1161_v32 = vrot.slane %v1160_v25, 1  ;;  %566 = sbr.rel (!%p564_p4) target bundleno = 70 (0x46), region = 93 }
 0x184   : >> { %v1125_v40 = vadd.f32 %v1483_v53, %v1124_v58   ;;  %v1162_v28 = vadd.f32 %v1161_v32, %v1160_v25 }
 0x186   : >> { %v1163_v35 = vadd.f32 %v1479_v52, %v1162_v28   ;;  %v2280_v53 = vmov %v1125_v40  ;;  %1164 = vst [vmem:[%s1655_s30] sm:$0x1] (%p564_p4), %v1125_v40 }
 0x188   : >> { %v2279_v52 = vmov %v1163_v35  ;;  %1165 = vst [vmem:[%s1655_s30 + $0x1] sm:$0x1] (%p564_p4), %v1163_v35 }
 0x189 PF: > { %s17_s21 = sadd.s32 1, %s1475_s21  }
 0x18a   : > { %p14_p5 = scmp.ge.s32.totalorder %s17_s21, 4  }
 0x18c   :  { %16 = sbr.rel (!%p14_p5) target bundleno = 1 (0x1), region = 104 }

</bundles_post_ra>
